<compile_context>
chip_gen: v5e
topology: v5e:2x2
jax: 0.10.0
libtpu: 0.0.40
codegen_flags: <defaults>
</compile_context>

<pallas_src>
import functools

import numpy as np
import jax
import jax.numpy as jnp
from jax.experimental import pallas as pl
from jax.experimental.pallas import tpu as pltpu


# ----------------------------- fused Pallas kernel -------------------------- #

def make_fused_lstm_kernel(num_layers, T, Bp, H):
    """Build the fused kernel. All shape params are static Python ints."""

    def kernel(x_ref, h0_ref, c0_ref, *args):
        # args = [wih_t_0, whh_t_0, b_0, ..., wih_t_{L-1}, whh_t_{L-1}, b_{L-1},
        #         wout_t, bout, o_ref]
        layer_refs = args[:3 * num_layers]
        wout_ref, bout_ref, o_ref = args[3 * num_layers:]

        seq_flat = None
        h = None
        for l in range(num_layers):
            wih_ref, whh_ref, b_ref = layer_refs[3 * l: 3 * l + 3]

            if l == 0:
                din = x_ref.shape[-1]
                seq_flat = x_ref[...].reshape(T * Bp, din)       # (T*Bp, D)
            # else: seq_flat is layer (l-1)'s hidden sequence, still in vregs.

            # Hoisted input projection (f32): ONE MXU matmul for all T steps.
            # Weights/bias already carry the 0.5 pre-scale on i/f/o columns.
            gx = (jnp.dot(seq_flat, wih_ref[...],
                          preferred_element_type=jnp.float32)
                  + b_ref[...]).reshape(T, Bp, 4 * H)            # (T, Bp, 4H)

            whh_bf = whh_ref[...]                                # (H, 4H) bf16
            h = h0_ref[l]                                        # (Bp, H) f32
            c = c0_ref[l]                                        # (Bp, H) f32
            write_seq = l < num_layers - 1
            hs = []

            for t in range(T):  # static unroll: T is small & fixed
                # Recurrent product: bf16 operands, f32 accumulation (MXU-native).
                gates = gx[t] + jnp.dot(h.astype(jnp.bfloat16), whh_bf,
                                        preferred_element_type=jnp.float32)
                # ONE EUP pass over the whole (Bp, 4H) gate tile.
                t_all = jnp.tanh(gates)
                i_g = 0.5 * t_all[:, 0 * H:1 * H] + 0.5   # = sigmoid(orig i)
                f_g = 0.5 * t_all[:, 1 * H:2 * H] + 0.5   # = sigmoid(orig f)
                g_g = t_all[:, 2 * H:3 * H]               # = tanh(orig g)
                o_g = 0.5 * t_all[:, 3 * H:4 * H] + 0.5   # = sigmoid(orig o)
                c = f_g * c + i_g * g_g
                h = o_g * jnp.tanh(c)
                if write_seq:
                    hs.append(h)          # sequence stays in registers

            if write_seq:
                seq_flat = jnp.concatenate(hs, axis=0)           # (T*Bp, H)

        # Head: ReLU(last hidden) @ W_out^T + b_out  -> lane-dense (Bp, 128) tile
        h_last = jnp.maximum(h, 0.0)
        o_ref[...] = (jnp.dot(h_last, wout_ref[...],
                              preferred_element_type=jnp.float32)
                      + bout_ref[...])

    return kernel


# ---------------------------------- wrapper --------------------------------- #

@functools.partial(jax.jit, static_argnums=(4,))
def lstm_model_forward(x, params, h0, c0, num_layers):
    """x: (B, T, D) batch-first, like the PyTorch module."""
    B, T, D = x.shape
    H = h0.shape[-1]
    Bp = ((B + 7) // 8) * 8                         # pad batch to full sublanes

    # Tiny XLA-side glue: time-major layout + batch padding (zeros are inert;
    # padded rows are sliced off after the kernel).
    x_tm = jnp.transpose(x, (1, 0, 2))              # (T, B, D)
    x_tm = jnp.pad(x_tm, ((0, 0), (0, Bp - B), (0, 0)))
    h0p = jnp.pad(h0, ((0, 0), (0, Bp - B), (0, 0)))
    c0p = jnp.pad(c0, ((0, 0), (0, Bp - B), (0, 0)))

    # Gate-column pre-scale: sigmoid(z) = 0.5*tanh(z/2) + 0.5, so halve the
    # i/f/o columns (PyTorch gate order i,f,g,o); g column stays unscaled.
    gate_scale = jnp.concatenate([
        jnp.full((H,), 0.5, jnp.float32),
        jnp.full((H,), 0.5, jnp.float32),
        jnp.full((H,), 1.0, jnp.float32),
        jnp.full((H,), 0.5, jnp.float32)])

    weight_args = []
    for l in range(num_layers):
        wih, whh, bih, bhh = params[f"lstm_l{l}"]
        wih_t = wih.T * gate_scale[None, :]                       # (Din, 4H) f32
        whh_t = (whh.T * gate_scale[None, :]).astype(jnp.bfloat16)  # (H, 4H) bf16
        b = ((bih + bhh) * gate_scale)[None, :]                   # (1, 4H) f32
        weight_args += [wih_t, whh_t, b]

    wout, bout = params["out"]
    n_out = wout.shape[0]
    n_out_pad = ((n_out + 127) // 128) * 128        # lane-dense output tile
    wout_t = jnp.pad(wout.T, ((0, 0), (0, n_out_pad - n_out)))   # (H, 128)
    bout_p = jnp.pad(bout, (0, n_out_pad - n_out))[None, :]      # (1, 128)

    n_inputs = 3 + 3 * num_layers + 2
    vmem_spec = pl.BlockSpec(memory_space=pltpu.MemorySpace.VMEM)

    out = pl.pallas_call(
        make_fused_lstm_kernel(num_layers, T, Bp, H),
        out_shape=jax.ShapeDtypeStruct((Bp, n_out_pad), jnp.float32),
        in_specs=[vmem_spec] * n_inputs,            # whole arrays resident in VMEM
        out_specs=vmem_spec,
    )(x_tm, h0p, c0p, *weight_args, wout_t, bout_p)

    return out[:B, :n_out]


# ------------------------- params + pure-JAX reference ---------------------- #

def init_params(key, input_dim, hidden, num_layers, num_outputs):
    params = {}
    bound = 1.0 / np.sqrt(hidden)
    keys = jax.random.split(key, 4 * num_layers + 2)
    for l in range(num_layers):
        din = input_dim if l == 0 else hidden
        k0, k1, k2, k3 = keys[4 * l: 4 * l + 4]
        params[f"lstm_l{l}"] = (
            jax.random.uniform(k0, (4 * hidden, din), jnp.float32, -bound, bound),
            jax.random.uniform(k1, (4 * hidden, hidden), jnp.float32, -bound, bound),
            jax.random.uniform(k2, (4 * hidden,), jnp.float32, -bound, bound),
            jax.random.uniform(k3, (4 * hidden,), jnp.float32, -bound, bound),
        )
    ko_w, ko_b = keys[-2:]
    ob = 1.0 / np.sqrt(hidden)
    params["out"] = (
        jax.random.uniform(ko_w, (num_outputs, hidden), jnp.float32, -ob, ob),
        jax.random.uniform(ko_b, (num_outputs,), jnp.float32, -ob, ob),
    )
    return params


def lstm_model_reference(x, params, h0, c0, num_layers, hidden):
    """Pure-JAX f32 reference with exact PyTorch LSTM semantics."""
    B, T, _ = x.shape
    out = x
    for l in range(num_layers):
        wih, whh, bih, bhh = params[f"lstm_l{l}"]
        h, c = h0[l], c0[l]
        ys = []
        for t in range(T):
            gates = out[:, t, :] @ wih.T + h @ whh.T + bih + bhh
            i_g = jax.nn.sigmoid(gates[:, :hidden])
            f_g = jax.nn.sigmoid(gates[:, hidden:2 * hidden])
            g_g = jnp.tanh(gates[:, 2 * hidden:3 * hidden])
            o_g = jax.nn.sigmoid(gates[:, 3 * hidden:])
            c = f_g * c + i_g * g_g
            h = o_g * jnp.tanh(c)
            ys.append(h)
        out = jnp.stack(ys, axis=1)
    h_last = jnp.maximum(out[:, -1, :], 0.0)
    wout, bout = params["out"]
    return h_last @ wout.T + bout


# ------------------------------------ main ----------------------------------- #

if __name__ == "__main__":
    B, T, D = 2, 8, 16          # batch, seq len, feature dim (input_shape[-1]=16)
    H = 32                      # hidden_size
    NUM_LAYERS = 2
    NUM_OUTPUTS = 3             # "3 continuous outputs"

    root = jax.random.PRNGKey(0)
    k_x, k_h, k_c, k_p = jax.random.split(root, 4)

    x = jax.random.normal(k_x, (B, T, D), jnp.float32)
    # torch.randn h_0 / c_0, made deterministic here.
    h0 = jax.random.normal(k_h, (NUM_LAYERS, B, H), jnp.float32)
    c0 = jax.random.normal(k_c, (NUM_LAYERS, B, H), jnp.float32)
    params = init_params(k_p, D, H, NUM_LAYERS, NUM_OUTPUTS)

    out = lstm_model_forward(x, params, h0, c0, NUM_LAYERS)
    out = jax.block_until_ready(out)

    ref = lstm_model_reference(x, params, h0, c0, NUM_LAYERS, H)
    # Tolerance relaxed vs. the pure-f32 version: the recurrent h @ W_hh^T
    # product now runs with bf16 MXU operands (f32 accumulation), which adds a
    # few-1e-3 drift over the 16 serial steps (per the perf review's guidance).
    np.testing.assert_allclose(np.asarray(out), np.asarray(ref),
                               rtol=2e-2, atol=2e-2)
    assert out.shape == (B, NUM_OUTPUTS)
    print("KERNEL_OK")
</pallas_src>

<mosaic_0001>
module attributes {stable_mosaic.version = 11 : i64} {
  func.func @kernel(%arg0: memref<8x8x16xf32, #tpu.memory_space<vmem>>, %arg1: memref<2x8x32xf32, #tpu.memory_space<vmem>>, %arg2: memref<2x8x32xf32, #tpu.memory_space<vmem>>, %arg3: memref<16x128xf32, #tpu.memory_space<vmem>>, %arg4: memref<32x128xbf16, #tpu.memory_space<vmem>>, %arg5: memref<1x128xf32, #tpu.memory_space<vmem>>, %arg6: memref<32x128xf32, #tpu.memory_space<vmem>>, %arg7: memref<32x128xbf16, #tpu.memory_space<vmem>>, %arg8: memref<1x128xf32, #tpu.memory_space<vmem>>, %arg9: memref<32x128xf32, #tpu.memory_space<vmem>>, %arg10: memref<1x128xf32, #tpu.memory_space<vmem>>, %arg11: memref<8x128xf32, #tpu.memory_space<vmem>>) attributes {dimension_semantics = [], scalar_prefetch = 0 : i64, scratch_operands = 0 : i64, tpu.core_type = #tpu.core_type<tc>} {
    %c0 = arith.constant 0 : index
    %c0_0 = arith.constant 0 : index
    %c0_1 = arith.constant 0 : index
    %0 = vector.load %arg0[%c0, %c0_0, %c0_1] : memref<8x8x16xf32, #tpu.memory_space<vmem>>, vector<8x8x16xf32>
    %1 = vector.shape_cast %0 : vector<8x8x16xf32> to vector<64x16xf32>
    %c0_2 = arith.constant 0 : index
    %c0_3 = arith.constant 0 : index
    %2 = vector.load %arg3[%c0_2, %c0_3] : memref<16x128xf32, #tpu.memory_space<vmem>>, vector<16x128xf32>
    %cst = arith.constant dense<0.000000e+00> : vector<64x128xf32>
    %3 = tpu.matmul %1, %2, %cst {dimension_numbers = #tpu.dot_dimension_numbers<[1], [0], [0], [1], [0, 0, 1, 1], [], []>} : vector<64x16xf32>, vector<16x128xf32>, vector<64x128xf32> -> vector<64x128xf32>
    %c0_4 = arith.constant 0 : index
    %c0_5 = arith.constant 0 : index
    %4 = vector.load %arg5[%c0_4, %c0_5] : memref<1x128xf32, #tpu.memory_space<vmem>>, vector<1x128xf32>
    %5 = vector.broadcast %4 : vector<1x128xf32> to vector<64x128xf32>
    %6 = arith.addf %3, %5 : vector<64x128xf32>
    %7 = vector.shape_cast %6 : vector<64x128xf32> to vector<8x8x128xf32>
    %c0_6 = arith.constant 0 : index
    %c0_7 = arith.constant 0 : index
    %8 = vector.load %arg4[%c0_6, %c0_7] : memref<32x128xbf16, #tpu.memory_space<vmem>>, vector<32x128xbf16>
    %c0_8 = arith.constant 0 : index
    %c0_9 = arith.constant 0 : index
    %c0_10 = arith.constant 0 : index
    %9 = vector.load %arg1[%c0_8, %c0_9, %c0_10] : memref<2x8x32xf32, #tpu.memory_space<vmem>>, vector<1x8x32xf32>
    %10 = vector.shape_cast %9 : vector<1x8x32xf32> to vector<8x32xf32>
    %c0_11 = arith.constant 0 : index
    %c0_12 = arith.constant 0 : index
    %c0_13 = arith.constant 0 : index
    %11 = vector.load %arg2[%c0_11, %c0_12, %c0_13] : memref<2x8x32xf32, #tpu.memory_space<vmem>>, vector<1x8x32xf32>
    %12 = vector.shape_cast %11 : vector<1x8x32xf32> to vector<8x32xf32>
    %13 = vector.extract_strided_slice %7 {offsets = [0, 0, 0], sizes = [1, 8, 128], strides = [1, 1, 1]} : vector<8x8x128xf32> to vector<1x8x128xf32>
    %14 = vector.shape_cast %13 : vector<1x8x128xf32> to vector<8x128xf32>
    %15 = arith.truncf %10 : vector<8x32xf32> to vector<8x32xbf16>
    %cst_14 = arith.constant dense<0.000000e+00> : vector<8x128xf32>
    %16 = tpu.matmul %15, %8, %cst_14 {dimension_numbers = #tpu.dot_dimension_numbers<[1], [0], [0], [1], [0, 0, 1, 1], [], []>} : vector<8x32xbf16>, vector<32x128xbf16>, vector<8x128xf32> -> vector<8x128xf32>
    %17 = arith.addf %14, %16 : vector<8x128xf32>
    %18 = math.tanh %17 : vector<8x128xf32>
    %19 = vector.extract_strided_slice %18 {offsets = [0, 0], sizes = [8, 32], strides = [1, 1]} : vector<8x128xf32> to vector<8x32xf32>
    %cst_15 = arith.constant 5.000000e-01 : f32
    %20 = vector.broadcast %cst_15 : f32 to vector<8x32xf32>
    %21 = arith.mulf %20, %19 : vector<8x32xf32>
    %cst_16 = arith.constant 5.000000e-01 : f32
    %22 = vector.broadcast %cst_16 : f32 to vector<8x32xf32>
    %23 = arith.addf %21, %22 : vector<8x32xf32>
    %24 = vector.extract_strided_slice %18 {offsets = [0, 32], sizes = [8, 32], strides = [1, 1]} : vector<8x128xf32> to vector<8x32xf32>
    %cst_17 = arith.constant 5.000000e-01 : f32
    %25 = vector.broadcast %cst_17 : f32 to vector<8x32xf32>
    %26 = arith.mulf %25, %24 : vector<8x32xf32>
    %cst_18 = arith.constant 5.000000e-01 : f32
    %27 = vector.broadcast %cst_18 : f32 to vector<8x32xf32>
    %28 = arith.addf %26, %27 : vector<8x32xf32>
    %29 = vector.extract_strided_slice %18 {offsets = [0, 64], sizes = [8, 32], strides = [1, 1]} : vector<8x128xf32> to vector<8x32xf32>
    %30 = vector.extract_strided_slice %18 {offsets = [0, 96], sizes = [8, 32], strides = [1, 1]} : vector<8x128xf32> to vector<8x32xf32>
    %cst_19 = arith.constant 5.000000e-01 : f32
    %31 = vector.broadcast %cst_19 : f32 to vector<8x32xf32>
    %32 = arith.mulf %31, %30 : vector<8x32xf32>
    %cst_20 = arith.constant 5.000000e-01 : f32
    %33 = vector.broadcast %cst_20 : f32 to vector<8x32xf32>
    %34 = arith.addf %32, %33 : vector<8x32xf32>
    %35 = arith.mulf %28, %12 : vector<8x32xf32>
    %36 = arith.mulf %23, %29 : vector<8x32xf32>
    %37 = arith.addf %35, %36 : vector<8x32xf32>
    %38 = math.tanh %37 : vector<8x32xf32>
    %39 = arith.mulf %34, %38 : vector<8x32xf32>
    %40 = vector.extract_strided_slice %7 {offsets = [1, 0, 0], sizes = [1, 8, 128], strides = [1, 1, 1]} : vector<8x8x128xf32> to vector<1x8x128xf32>
    %41 = vector.shape_cast %40 : vector<1x8x128xf32> to vector<8x128xf32>
    %42 = arith.truncf %39 : vector<8x32xf32> to vector<8x32xbf16>
    %cst_21 = arith.constant dense<0.000000e+00> : vector<8x128xf32>
    %43 = tpu.matmul %42, %8, %cst_21 {dimension_numbers = #tpu.dot_dimension_numbers<[1], [0], [0], [1], [0, 0, 1, 1], [], []>} : vector<8x32xbf16>, vector<32x128xbf16>, vector<8x128xf32> -> vector<8x128xf32>
    %44 = arith.addf %41, %43 : vector<8x128xf32>
    %45 = math.tanh %44 : vector<8x128xf32>
    %46 = vector.extract_strided_slice %45 {offsets = [0, 0], sizes = [8, 32], strides = [1, 1]} : vector<8x128xf32> to vector<8x32xf32>
    %cst_22 = arith.constant 5.000000e-01 : f32
    %47 = vector.broadcast %cst_22 : f32 to vector<8x32xf32>
    %48 = arith.mulf %47, %46 : vector<8x32xf32>
    %cst_23 = arith.constant 5.000000e-01 : f32
    %49 = vector.broadcast %cst_23 : f32 to vector<8x32xf32>
    %50 = arith.addf %48, %49 : vector<8x32xf32>
    %51 = vector.extract_strided_slice %45 {offsets = [0, 32], sizes = [8, 32], strides = [1, 1]} : vector<8x128xf32> to vector<8x32xf32>
    %cst_24 = arith.constant 5.000000e-01 : f32
    %52 = vector.broadcast %cst_24 : f32 to vector<8x32xf32>
    %53 = arith.mulf %52, %51 : vector<8x32xf32>
    %cst_25 = arith.constant 5.000000e-01 : f32
    %54 = vector.broadcast %cst_25 : f32 to vector<8x32xf32>
    %55 = arith.addf %53, %54 : vector<8x32xf32>
    %56 = vector.extract_strided_slice %45 {offsets = [0, 64], sizes = [8, 32], strides = [1, 1]} : vector<8x128xf32> to vector<8x32xf32>
    %57 = vector.extract_strided_slice %45 {offsets = [0, 96], sizes = [8, 32], strides = [1, 1]} : vector<8x128xf32> to vector<8x32xf32>
    %cst_26 = arith.constant 5.000000e-01 : f32
    %58 = vector.broadcast %cst_26 : f32 to vector<8x32xf32>
    %59 = arith.mulf %58, %57 : vector<8x32xf32>
    %cst_27 = arith.constant 5.000000e-01 : f32
    %60 = vector.broadcast %cst_27 : f32 to vector<8x32xf32>
    %61 = arith.addf %59, %60 : vector<8x32xf32>
    %62 = arith.mulf %55, %37 : vector<8x32xf32>
    %63 = arith.mulf %50, %56 : vector<8x32xf32>
    %64 = arith.addf %62, %63 : vector<8x32xf32>
    %65 = math.tanh %64 : vector<8x32xf32>
    %66 = arith.mulf %61, %65 : vector<8x32xf32>
    %67 = vector.extract_strided_slice %7 {offsets = [2, 0, 0], sizes = [1, 8, 128], strides = [1, 1, 1]} : vector<8x8x128xf32> to vector<1x8x128xf32>
    %68 = vector.shape_cast %67 : vector<1x8x128xf32> to vector<8x128xf32>
    %69 = arith.truncf %66 : vector<8x32xf32> to vector<8x32xbf16>
    %cst_28 = arith.constant dense<0.000000e+00> : vector<8x128xf32>
    %70 = tpu.matmul %69, %8, %cst_28 {dimension_numbers = #tpu.dot_dimension_numbers<[1], [0], [0], [1], [0, 0, 1, 1], [], []>} : vector<8x32xbf16>, vector<32x128xbf16>, vector<8x128xf32> -> vector<8x128xf32>
    %71 = arith.addf %68, %70 : vector<8x128xf32>
    %72 = math.tanh %71 : vector<8x128xf32>
    %73 = vector.extract_strided_slice %72 {offsets = [0, 0], sizes = [8, 32], strides = [1, 1]} : vector<8x128xf32> to vector<8x32xf32>
    %cst_29 = arith.constant 5.000000e-01 : f32
    %74 = vector.broadcast %cst_29 : f32 to vector<8x32xf32>
    %75 = arith.mulf %74, %73 : vector<8x32xf32>
    %cst_30 = arith.constant 5.000000e-01 : f32
    %76 = vector.broadcast %cst_30 : f32 to vector<8x32xf32>
    %77 = arith.addf %75, %76 : vector<8x32xf32>
    %78 = vector.extract_strided_slice %72 {offsets = [0, 32], sizes = [8, 32], strides = [1, 1]} : vector<8x128xf32> to vector<8x32xf32>
    %cst_31 = arith.constant 5.000000e-01 : f32
    %79 = vector.broadcast %cst_31 : f32 to vector<8x32xf32>
    %80 = arith.mulf %79, %78 : vector<8x32xf32>
    %cst_32 = arith.constant 5.000000e-01 : f32
    %81 = vector.broadcast %cst_32 : f32 to vector<8x32xf32>
    %82 = arith.addf %80, %81 : vector<8x32xf32>
    %83 = vector.extract_strided_slice %72 {offsets = [0, 64], sizes = [8, 32], strides = [1, 1]} : vector<8x128xf32> to vector<8x32xf32>
    %84 = vector.extract_strided_slice %72 {offsets = [0, 96], sizes = [8, 32], strides = [1, 1]} : vector<8x128xf32> to vector<8x32xf32>
    %cst_33 = arith.constant 5.000000e-01 : f32
    %85 = vector.broadcast %cst_33 : f32 to vector<8x32xf32>
    %86 = arith.mulf %85, %84 : vector<8x32xf32>
    %cst_34 = arith.constant 5.000000e-01 : f32
    %87 = vector.broadcast %cst_34 : f32 to vector<8x32xf32>
    %88 = arith.addf %86, %87 : vector<8x32xf32>
    %89 = arith.mulf %82, %64 : vector<8x32xf32>
    %90 = arith.mulf %77, %83 : vector<8x32xf32>
    %91 = arith.addf %89, %90 : vector<8x32xf32>
    %92 = math.tanh %91 : vector<8x32xf32>
    %93 = arith.mulf %88, %92 : vector<8x32xf32>
    %94 = vector.extract_strided_slice %7 {offsets = [3, 0, 0], sizes = [1, 8, 128], strides = [1, 1, 1]} : vector<8x8x128xf32> to vector<1x8x128xf32>
    %95 = vector.shape_cast %94 : vector<1x8x128xf32> to vector<8x128xf32>
    %96 = arith.truncf %93 : vector<8x32xf32> to vector<8x32xbf16>
    %cst_35 = arith.constant dense<0.000000e+00> : vector<8x128xf32>
    %97 = tpu.matmul %96, %8, %cst_35 {dimension_numbers = #tpu.dot_dimension_numbers<[1], [0], [0], [1], [0, 0, 1, 1], [], []>} : vector<8x32xbf16>, vector<32x128xbf16>, vector<8x128xf32> -> vector<8x128xf32>
    %98 = arith.addf %95, %97 : vector<8x128xf32>
    %99 = math.tanh %98 : vector<8x128xf32>
    %100 = vector.extract_strided_slice %99 {offsets = [0, 0], sizes = [8, 32], strides = [1, 1]} : vector<8x128xf32> to vector<8x32xf32>
    %cst_36 = arith.constant 5.000000e-01 : f32
    %101 = vector.broadcast %cst_36 : f32 to vector<8x32xf32>
    %102 = arith.mulf %101, %100 : vector<8x32xf32>
    %cst_37 = arith.constant 5.000000e-01 : f32
    %103 = vector.broadcast %cst_37 : f32 to vector<8x32xf32>
    %104 = arith.addf %102, %103 : vector<8x32xf32>
    %105 = vector.extract_strided_slice %99 {offsets = [0, 32], sizes = [8, 32], strides = [1, 1]} : vector<8x128xf32> to vector<8x32xf32>
    %cst_38 = arith.constant 5.000000e-01 : f32
    %106 = vector.broadcast %cst_38 : f32 to vector<8x32xf32>
    %107 = arith.mulf %106, %105 : vector<8x32xf32>
    %cst_39 = arith.constant 5.000000e-01 : f32
    %108 = vector.broadcast %cst_39 : f32 to vector<8x32xf32>
    %109 = arith.addf %107, %108 : vector<8x32xf32>
    %110 = vector.extract_strided_slice %99 {offsets = [0, 64], sizes = [8, 32], strides = [1, 1]} : vector<8x128xf32> to vector<8x32xf32>
    %111 = vector.extract_strided_slice %99 {offsets = [0, 96], sizes = [8, 32], strides = [1, 1]} : vector<8x128xf32> to vector<8x32xf32>
    %cst_40 = arith.constant 5.000000e-01 : f32
    %112 = vector.broadcast %cst_40 : f32 to vector<8x32xf32>
    %113 = arith.mulf %112, %111 : vector<8x32xf32>
    %cst_41 = arith.constant 5.000000e-01 : f32
    %114 = vector.broadcast %cst_41 : f32 to vector<8x32xf32>
    %115 = arith.addf %113, %114 : vector<8x32xf32>
    %116 = arith.mulf %109, %91 : vector<8x32xf32>
    %117 = arith.mulf %104, %110 : vector<8x32xf32>
    %118 = arith.addf %116, %117 : vector<8x32xf32>
    %119 = math.tanh %118 : vector<8x32xf32>
    %120 = arith.mulf %115, %119 : vector<8x32xf32>
    %121 = vector.extract_strided_slice %7 {offsets = [4, 0, 0], sizes = [1, 8, 128], strides = [1, 1, 1]} : vector<8x8x128xf32> to vector<1x8x128xf32>
    %122 = vector.shape_cast %121 : vector<1x8x128xf32> to vector<8x128xf32>
    %123 = arith.truncf %120 : vector<8x32xf32> to vector<8x32xbf16>
    %cst_42 = arith.constant dense<0.000000e+00> : vector<8x128xf32>
    %124 = tpu.matmul %123, %8, %cst_42 {dimension_numbers = #tpu.dot_dimension_numbers<[1], [0], [0], [1], [0, 0, 1, 1], [], []>} : vector<8x32xbf16>, vector<32x128xbf16>, vector<8x128xf32> -> vector<8x128xf32>
    %125 = arith.addf %122, %124 : vector<8x128xf32>
    %126 = math.tanh %125 : vector<8x128xf32>
    %127 = vector.extract_strided_slice %126 {offsets = [0, 0], sizes = [8, 32], strides = [1, 1]} : vector<8x128xf32> to vector<8x32xf32>
    %cst_43 = arith.constant 5.000000e-01 : f32
    %128 = vector.broadcast %cst_43 : f32 to vector<8x32xf32>
    %129 = arith.mulf %128, %127 : vector<8x32xf32>
    %cst_44 = arith.constant 5.000000e-01 : f32
    %130 = vector.broadcast %cst_44 : f32 to vector<8x32xf32>
    %131 = arith.addf %129, %130 : vector<8x32xf32>
    %132 = vector.extract_strided_slice %126 {offsets = [0, 32], sizes = [8, 32], strides = [1, 1]} : vector<8x128xf32> to vector<8x32xf32>
    %cst_45 = arith.constant 5.000000e-01 : f32
    %133 = vector.broadcast %cst_45 : f32 to vector<8x32xf32>
    %134 = arith.mulf %133, %132 : vector<8x32xf32>
    %cst_46 = arith.constant 5.000000e-01 : f32
    %135 = vector.broadcast %cst_46 : f32 to vector<8x32xf32>
    %136 = arith.addf %134, %135 : vector<8x32xf32>
    %137 = vector.extract_strided_slice %126 {offsets = [0, 64], sizes = [8, 32], strides = [1, 1]} : vector<8x128xf32> to vector<8x32xf32>
    %138 = vector.extract_strided_slice %126 {offsets = [0, 96], sizes = [8, 32], strides = [1, 1]} : vector<8x128xf32> to vector<8x32xf32>
    %cst_47 = arith.constant 5.000000e-01 : f32
    %139 = vector.broadcast %cst_47 : f32 to vector<8x32xf32>
    %140 = arith.mulf %139, %138 : vector<8x32xf32>
    %cst_48 = arith.constant 5.000000e-01 : f32
    %141 = vector.broadcast %cst_48 : f32 to vector<8x32xf32>
    %142 = arith.addf %140, %141 : vector<8x32xf32>
    %143 = arith.mulf %136, %118 : vector<8x32xf32>
    %144 = arith.mulf %131, %137 : vector<8x32xf32>
    %145 = arith.addf %143, %144 : vector<8x32xf32>
    %146 = math.tanh %145 : vector<8x32xf32>
    %147 = arith.mulf %142, %146 : vector<8x32xf32>
    %148 = vector.extract_strided_slice %7 {offsets = [5, 0, 0], sizes = [1, 8, 128], strides = [1, 1, 1]} : vector<8x8x128xf32> to vector<1x8x128xf32>
    %149 = vector.shape_cast %148 : vector<1x8x128xf32> to vector<8x128xf32>
    %150 = arith.truncf %147 : vector<8x32xf32> to vector<8x32xbf16>
    %cst_49 = arith.constant dense<0.000000e+00> : vector<8x128xf32>
    %151 = tpu.matmul %150, %8, %cst_49 {dimension_numbers = #tpu.dot_dimension_numbers<[1], [0], [0], [1], [0, 0, 1, 1], [], []>} : vector<8x32xbf16>, vector<32x128xbf16>, vector<8x128xf32> -> vector<8x128xf32>
    %152 = arith.addf %149, %151 : vector<8x128xf32>
    %153 = math.tanh %152 : vector<8x128xf32>
    %154 = vector.extract_strided_slice %153 {offsets = [0, 0], sizes = [8, 32], strides = [1, 1]} : vector<8x128xf32> to vector<8x32xf32>
    %cst_50 = arith.constant 5.000000e-01 : f32
    %155 = vector.broadcast %cst_50 : f32 to vector<8x32xf32>
    %156 = arith.mulf %155, %154 : vector<8x32xf32>
    %cst_51 = arith.constant 5.000000e-01 : f32
    %157 = vector.broadcast %cst_51 : f32 to vector<8x32xf32>
    %158 = arith.addf %156, %157 : vector<8x32xf32>
    %159 = vector.extract_strided_slice %153 {offsets = [0, 32], sizes = [8, 32], strides = [1, 1]} : vector<8x128xf32> to vector<8x32xf32>
    %cst_52 = arith.constant 5.000000e-01 : f32
    %160 = vector.broadcast %cst_52 : f32 to vector<8x32xf32>
    %161 = arith.mulf %160, %159 : vector<8x32xf32>
    %cst_53 = arith.constant 5.000000e-01 : f32
    %162 = vector.broadcast %cst_53 : f32 to vector<8x32xf32>
    %163 = arith.addf %161, %162 : vector<8x32xf32>
    %164 = vector.extract_strided_slice %153 {offsets = [0, 64], sizes = [8, 32], strides = [1, 1]} : vector<8x128xf32> to vector<8x32xf32>
    %165 = vector.extract_strided_slice %153 {offsets = [0, 96], sizes = [8, 32], strides = [1, 1]} : vector<8x128xf32> to vector<8x32xf32>
    %cst_54 = arith.constant 5.000000e-01 : f32
    %166 = vector.broadcast %cst_54 : f32 to vector<8x32xf32>
    %167 = arith.mulf %166, %165 : vector<8x32xf32>
    %cst_55 = arith.constant 5.000000e-01 : f32
    %168 = vector.broadcast %cst_55 : f32 to vector<8x32xf32>
    %169 = arith.addf %167, %168 : vector<8x32xf32>
    %170 = arith.mulf %163, %145 : vector<8x32xf32>
    %171 = arith.mulf %158, %164 : vector<8x32xf32>
    %172 = arith.addf %170, %171 : vector<8x32xf32>
    %173 = math.tanh %172 : vector<8x32xf32>
    %174 = arith.mulf %169, %173 : vector<8x32xf32>
    %175 = vector.extract_strided_slice %7 {offsets = [6, 0, 0], sizes = [1, 8, 128], strides = [1, 1, 1]} : vector<8x8x128xf32> to vector<1x8x128xf32>
    %176 = vector.shape_cast %175 : vector<1x8x128xf32> to vector<8x128xf32>
    %177 = arith.truncf %174 : vector<8x32xf32> to vector<8x32xbf16>
    %cst_56 = arith.constant dense<0.000000e+00> : vector<8x128xf32>
    %178 = tpu.matmul %177, %8, %cst_56 {dimension_numbers = #tpu.dot_dimension_numbers<[1], [0], [0], [1], [0, 0, 1, 1], [], []>} : vector<8x32xbf16>, vector<32x128xbf16>, vector<8x128xf32> -> vector<8x128xf32>
    %179 = arith.addf %176, %178 : vector<8x128xf32>
    %180 = math.tanh %179 : vector<8x128xf32>
    %181 = vector.extract_strided_slice %180 {offsets = [0, 0], sizes = [8, 32], strides = [1, 1]} : vector<8x128xf32> to vector<8x32xf32>
    %cst_57 = arith.constant 5.000000e-01 : f32
    %182 = vector.broadcast %cst_57 : f32 to vector<8x32xf32>
    %183 = arith.mulf %182, %181 : vector<8x32xf32>
    %cst_58 = arith.constant 5.000000e-01 : f32
    %184 = vector.broadcast %cst_58 : f32 to vector<8x32xf32>
    %185 = arith.addf %183, %184 : vector<8x32xf32>
    %186 = vector.extract_strided_slice %180 {offsets = [0, 32], sizes = [8, 32], strides = [1, 1]} : vector<8x128xf32> to vector<8x32xf32>
    %cst_59 = arith.constant 5.000000e-01 : f32
    %187 = vector.broadcast %cst_59 : f32 to vector<8x32xf32>
    %188 = arith.mulf %187, %186 : vector<8x32xf32>
    %cst_60 = arith.constant 5.000000e-01 : f32
    %189 = vector.broadcast %cst_60 : f32 to vector<8x32xf32>
    %190 = arith.addf %188, %189 : vector<8x32xf32>
    %191 = vector.extract_strided_slice %180 {offsets = [0, 64], sizes = [8, 32], strides = [1, 1]} : vector<8x128xf32> to vector<8x32xf32>
    %192 = vector.extract_strided_slice %180 {offsets = [0, 96], sizes = [8, 32], strides = [1, 1]} : vector<8x128xf32> to vector<8x32xf32>
    %cst_61 = arith.constant 5.000000e-01 : f32
    %193 = vector.broadcast %cst_61 : f32 to vector<8x32xf32>
    %194 = arith.mulf %193, %192 : vector<8x32xf32>
    %cst_62 = arith.constant 5.000000e-01 : f32
    %195 = vector.broadcast %cst_62 : f32 to vector<8x32xf32>
    %196 = arith.addf %194, %195 : vector<8x32xf32>
    %197 = arith.mulf %190, %172 : vector<8x32xf32>
    %198 = arith.mulf %185, %191 : vector<8x32xf32>
    %199 = arith.addf %197, %198 : vector<8x32xf32>
    %200 = math.tanh %199 : vector<8x32xf32>
    %201 = arith.mulf %196, %200 : vector<8x32xf32>
    %202 = vector.extract_strided_slice %7 {offsets = [7, 0, 0], sizes = [1, 8, 128], strides = [1, 1, 1]} : vector<8x8x128xf32> to vector<1x8x128xf32>
    %203 = vector.shape_cast %202 : vector<1x8x128xf32> to vector<8x128xf32>
    %204 = arith.truncf %201 : vector<8x32xf32> to vector<8x32xbf16>
    %cst_63 = arith.constant dense<0.000000e+00> : vector<8x128xf32>
    %205 = tpu.matmul %204, %8, %cst_63 {dimension_numbers = #tpu.dot_dimension_numbers<[1], [0], [0], [1], [0, 0, 1, 1], [], []>} : vector<8x32xbf16>, vector<32x128xbf16>, vector<8x128xf32> -> vector<8x128xf32>
    %206 = arith.addf %203, %205 : vector<8x128xf32>
    %207 = math.tanh %206 : vector<8x128xf32>
    %208 = vector.extract_strided_slice %207 {offsets = [0, 0], sizes = [8, 32], strides = [1, 1]} : vector<8x128xf32> to vector<8x32xf32>
    %cst_64 = arith.constant 5.000000e-01 : f32
    %209 = vector.broadcast %cst_64 : f32 to vector<8x32xf32>
    %210 = arith.mulf %209, %208 : vector<8x32xf32>
    %cst_65 = arith.constant 5.000000e-01 : f32
    %211 = vector.broadcast %cst_65 : f32 to vector<8x32xf32>
    %212 = arith.addf %210, %211 : vector<8x32xf32>
    %213 = vector.extract_strided_slice %207 {offsets = [0, 32], sizes = [8, 32], strides = [1, 1]} : vector<8x128xf32> to vector<8x32xf32>
    %cst_66 = arith.constant 5.000000e-01 : f32
    %214 = vector.broadcast %cst_66 : f32 to vector<8x32xf32>
    %215 = arith.mulf %214, %213 : vector<8x32xf32>
    %cst_67 = arith.constant 5.000000e-01 : f32
    %216 = vector.broadcast %cst_67 : f32 to vector<8x32xf32>
    %217 = arith.addf %215, %216 : vector<8x32xf32>
    %218 = vector.extract_strided_slice %207 {offsets = [0, 64], sizes = [8, 32], strides = [1, 1]} : vector<8x128xf32> to vector<8x32xf32>
    %219 = vector.extract_strided_slice %207 {offsets = [0, 96], sizes = [8, 32], strides = [1, 1]} : vector<8x128xf32> to vector<8x32xf32>
    %cst_68 = arith.constant 5.000000e-01 : f32
    %220 = vector.broadcast %cst_68 : f32 to vector<8x32xf32>
    %221 = arith.mulf %220, %219 : vector<8x32xf32>
    %cst_69 = arith.constant 5.000000e-01 : f32
    %222 = vector.broadcast %cst_69 : f32 to vector<8x32xf32>
    %223 = arith.addf %221, %222 : vector<8x32xf32>
    %224 = arith.mulf %217, %199 : vector<8x32xf32>
    %225 = arith.mulf %212, %218 : vector<8x32xf32>
    %226 = arith.addf %224, %225 : vector<8x32xf32>
    %227 = math.tanh %226 : vector<8x32xf32>
    %228 = arith.mulf %223, %227 : vector<8x32xf32>
    %229 = tpu.concatenate %39, %66, %93, %120, %147, %174, %201, %228 in 0 : vector<8x32xf32>, vector<8x32xf32>, vector<8x32xf32>, vector<8x32xf32>, vector<8x32xf32>, vector<8x32xf32>, vector<8x32xf32>, vector<8x32xf32> -> vector<64x32xf32>
    %c0_70 = arith.constant 0 : index
    %c0_71 = arith.constant 0 : index
    %230 = vector.load %arg6[%c0_70, %c0_71] : memref<32x128xf32, #tpu.memory_space<vmem>>, vector<32x128xf32>
    %cst_72 = arith.constant dense<0.000000e+00> : vector<64x128xf32>
    %231 = tpu.matmul %229, %230, %cst_72 {dimension_numbers = #tpu.dot_dimension_numbers<[1], [0], [0], [1], [0, 0, 1, 1], [], []>} : vector<64x32xf32>, vector<32x128xf32>, vector<64x128xf32> -> vector<64x128xf32>
    %c0_73 = arith.constant 0 : index
    %c0_74 = arith.constant 0 : index
    %232 = vector.load %arg8[%c0_73, %c0_74] : memref<1x128xf32, #tpu.memory_space<vmem>>, vector<1x128xf32>
    %233 = vector.broadcast %232 : vector<1x128xf32> to vector<64x128xf32>
    %234 = arith.addf %231, %233 : vector<64x128xf32>
    %235 = vector.shape_cast %234 : vector<64x128xf32> to vector<8x8x128xf32>
    %c0_75 = arith.constant 0 : index
    %c0_76 = arith.constant 0 : index
    %236 = vector.load %arg7[%c0_75, %c0_76] : memref<32x128xbf16, #tpu.memory_space<vmem>>, vector<32x128xbf16>
    %c1 = arith.constant 1 : index
    %c0_77 = arith.constant 0 : index
    %c0_78 = arith.constant 0 : index
    %237 = vector.load %arg1[%c1, %c0_77, %c0_78] : memref<2x8x32xf32, #tpu.memory_space<vmem>>, vector<1x8x32xf32>
    %238 = vector.shape_cast %237 : vector<1x8x32xf32> to vector<8x32xf32>
    %c1_79 = arith.constant 1 : index
    %c0_80 = arith.constant 0 : index
    %c0_81 = arith.constant 0 : index
    %239 = vector.load %arg2[%c1_79, %c0_80, %c0_81] : memref<2x8x32xf32, #tpu.memory_space<vmem>>, vector<1x8x32xf32>
    %240 = vector.shape_cast %239 : vector<1x8x32xf32> to vector<8x32xf32>
    %241 = vector.extract_strided_slice %235 {offsets = [0, 0, 0], sizes = [1, 8, 128], strides = [1, 1, 1]} : vector<8x8x128xf32> to vector<1x8x128xf32>
    %242 = vector.shape_cast %241 : vector<1x8x128xf32> to vector<8x128xf32>
    %243 = arith.truncf %238 : vector<8x32xf32> to vector<8x32xbf16>
    %cst_82 = arith.constant dense<0.000000e+00> : vector<8x128xf32>
    %244 = tpu.matmul %243, %236, %cst_82 {dimension_numbers = #tpu.dot_dimension_numbers<[1], [0], [0], [1], [0, 0, 1, 1], [], []>} : vector<8x32xbf16>, vector<32x128xbf16>, vector<8x128xf32> -> vector<8x128xf32>
    %245 = arith.addf %242, %244 : vector<8x128xf32>
    %246 = math.tanh %245 : vector<8x128xf32>
    %247 = vector.extract_strided_slice %246 {offsets = [0, 0], sizes = [8, 32], strides = [1, 1]} : vector<8x128xf32> to vector<8x32xf32>
    %cst_83 = arith.constant 5.000000e-01 : f32
    %248 = vector.broadcast %cst_83 : f32 to vector<8x32xf32>
    %249 = arith.mulf %248, %247 : vector<8x32xf32>
    %cst_84 = arith.constant 5.000000e-01 : f32
    %250 = vector.broadcast %cst_84 : f32 to vector<8x32xf32>
    %251 = arith.addf %249, %250 : vector<8x32xf32>
    %252 = vector.extract_strided_slice %246 {offsets = [0, 32], sizes = [8, 32], strides = [1, 1]} : vector<8x128xf32> to vector<8x32xf32>
    %cst_85 = arith.constant 5.000000e-01 : f32
    %253 = vector.broadcast %cst_85 : f32 to vector<8x32xf32>
    %254 = arith.mulf %253, %252 : vector<8x32xf32>
    %cst_86 = arith.constant 5.000000e-01 : f32
    %255 = vector.broadcast %cst_86 : f32 to vector<8x32xf32>
    %256 = arith.addf %254, %255 : vector<8x32xf32>
    %257 = vector.extract_strided_slice %246 {offsets = [0, 64], sizes = [8, 32], strides = [1, 1]} : vector<8x128xf32> to vector<8x32xf32>
    %258 = vector.extract_strided_slice %246 {offsets = [0, 96], sizes = [8, 32], strides = [1, 1]} : vector<8x128xf32> to vector<8x32xf32>
    %cst_87 = arith.constant 5.000000e-01 : f32
    %259 = vector.broadcast %cst_87 : f32 to vector<8x32xf32>
    %260 = arith.mulf %259, %258 : vector<8x32xf32>
    %cst_88 = arith.constant 5.000000e-01 : f32
    %261 = vector.broadcast %cst_88 : f32 to vector<8x32xf32>
    %262 = arith.addf %260, %261 : vector<8x32xf32>
    %263 = arith.mulf %256, %240 : vector<8x32xf32>
    %264 = arith.mulf %251, %257 : vector<8x32xf32>
    %265 = arith.addf %263, %264 : vector<8x32xf32>
    %266 = math.tanh %265 : vector<8x32xf32>
    %267 = arith.mulf %262, %266 : vector<8x32xf32>
    %268 = vector.extract_strided_slice %235 {offsets = [1, 0, 0], sizes = [1, 8, 128], strides = [1, 1, 1]} : vector<8x8x128xf32> to vector<1x8x128xf32>
    %269 = vector.shape_cast %268 : vector<1x8x128xf32> to vector<8x128xf32>
    %270 = arith.truncf %267 : vector<8x32xf32> to vector<8x32xbf16>
    %cst_89 = arith.constant dense<0.000000e+00> : vector<8x128xf32>
    %271 = tpu.matmul %270, %236, %cst_89 {dimension_numbers = #tpu.dot_dimension_numbers<[1], [0], [0], [1], [0, 0, 1, 1], [], []>} : vector<8x32xbf16>, vector<32x128xbf16>, vector<8x128xf32> -> vector<8x128xf32>
    %272 = arith.addf %269, %271 : vector<8x128xf32>
    %273 = math.tanh %272 : vector<8x128xf32>
    %274 = vector.extract_strided_slice %273 {offsets = [0, 0], sizes = [8, 32], strides = [1, 1]} : vector<8x128xf32> to vector<8x32xf32>
    %cst_90 = arith.constant 5.000000e-01 : f32
    %275 = vector.broadcast %cst_90 : f32 to vector<8x32xf32>
    %276 = arith.mulf %275, %274 : vector<8x32xf32>
    %cst_91 = arith.constant 5.000000e-01 : f32
    %277 = vector.broadcast %cst_91 : f32 to vector<8x32xf32>
    %278 = arith.addf %276, %277 : vector<8x32xf32>
    %279 = vector.extract_strided_slice %273 {offsets = [0, 32], sizes = [8, 32], strides = [1, 1]} : vector<8x128xf32> to vector<8x32xf32>
    %cst_92 = arith.constant 5.000000e-01 : f32
    %280 = vector.broadcast %cst_92 : f32 to vector<8x32xf32>
    %281 = arith.mulf %280, %279 : vector<8x32xf32>
    %cst_93 = arith.constant 5.000000e-01 : f32
    %282 = vector.broadcast %cst_93 : f32 to vector<8x32xf32>
    %283 = arith.addf %281, %282 : vector<8x32xf32>
    %284 = vector.extract_strided_slice %273 {offsets = [0, 64], sizes = [8, 32], strides = [1, 1]} : vector<8x128xf32> to vector<8x32xf32>
    %285 = vector.extract_strided_slice %273 {offsets = [0, 96], sizes = [8, 32], strides = [1, 1]} : vector<8x128xf32> to vector<8x32xf32>
    %cst_94 = arith.constant 5.000000e-01 : f32
    %286 = vector.broadcast %cst_94 : f32 to vector<8x32xf32>
    %287 = arith.mulf %286, %285 : vector<8x32xf32>
    %cst_95 = arith.constant 5.000000e-01 : f32
    %288 = vector.broadcast %cst_95 : f32 to vector<8x32xf32>
    %289 = arith.addf %287, %288 : vector<8x32xf32>
    %290 = arith.mulf %283, %265 : vector<8x32xf32>
    %291 = arith.mulf %278, %284 : vector<8x32xf32>
    %292 = arith.addf %290, %291 : vector<8x32xf32>
    %293 = math.tanh %292 : vector<8x32xf32>
    %294 = arith.mulf %289, %293 : vector<8x32xf32>
    %295 = vector.extract_strided_slice %235 {offsets = [2, 0, 0], sizes = [1, 8, 128], strides = [1, 1, 1]} : vector<8x8x128xf32> to vector<1x8x128xf32>
    %296 = vector.shape_cast %295 : vector<1x8x128xf32> to vector<8x128xf32>
    %297 = arith.truncf %294 : vector<8x32xf32> to vector<8x32xbf16>
    %cst_96 = arith.constant dense<0.000000e+00> : vector<8x128xf32>
    %298 = tpu.matmul %297, %236, %cst_96 {dimension_numbers = #tpu.dot_dimension_numbers<[1], [0], [0], [1], [0, 0, 1, 1], [], []>} : vector<8x32xbf16>, vector<32x128xbf16>, vector<8x128xf32> -> vector<8x128xf32>
    %299 = arith.addf %296, %298 : vector<8x128xf32>
    %300 = math.tanh %299 : vector<8x128xf32>
    %301 = vector.extract_strided_slice %300 {offsets = [0, 0], sizes = [8, 32], strides = [1, 1]} : vector<8x128xf32> to vector<8x32xf32>
    %cst_97 = arith.constant 5.000000e-01 : f32
    %302 = vector.broadcast %cst_97 : f32 to vector<8x32xf32>
    %303 = arith.mulf %302, %301 : vector<8x32xf32>
    %cst_98 = arith.constant 5.000000e-01 : f32
    %304 = vector.broadcast %cst_98 : f32 to vector<8x32xf32>
    %305 = arith.addf %303, %304 : vector<8x32xf32>
    %306 = vector.extract_strided_slice %300 {offsets = [0, 32], sizes = [8, 32], strides = [1, 1]} : vector<8x128xf32> to vector<8x32xf32>
    %cst_99 = arith.constant 5.000000e-01 : f32
    %307 = vector.broadcast %cst_99 : f32 to vector<8x32xf32>
    %308 = arith.mulf %307, %306 : vector<8x32xf32>
    %cst_100 = arith.constant 5.000000e-01 : f32
    %309 = vector.broadcast %cst_100 : f32 to vector<8x32xf32>
    %310 = arith.addf %308, %309 : vector<8x32xf32>
    %311 = vector.extract_strided_slice %300 {offsets = [0, 64], sizes = [8, 32], strides = [1, 1]} : vector<8x128xf32> to vector<8x32xf32>
    %312 = vector.extract_strided_slice %300 {offsets = [0, 96], sizes = [8, 32], strides = [1, 1]} : vector<8x128xf32> to vector<8x32xf32>
    %cst_101 = arith.constant 5.000000e-01 : f32
    %313 = vector.broadcast %cst_101 : f32 to vector<8x32xf32>
    %314 = arith.mulf %313, %312 : vector<8x32xf32>
    %cst_102 = arith.constant 5.000000e-01 : f32
    %315 = vector.broadcast %cst_102 : f32 to vector<8x32xf32>
    %316 = arith.addf %314, %315 : vector<8x32xf32>
    %317 = arith.mulf %310, %292 : vector<8x32xf32>
    %318 = arith.mulf %305, %311 : vector<8x32xf32>
    %319 = arith.addf %317, %318 : vector<8x32xf32>
    %320 = math.tanh %319 : vector<8x32xf32>
    %321 = arith.mulf %316, %320 : vector<8x32xf32>
    %322 = vector.extract_strided_slice %235 {offsets = [3, 0, 0], sizes = [1, 8, 128], strides = [1, 1, 1]} : vector<8x8x128xf32> to vector<1x8x128xf32>
    %323 = vector.shape_cast %322 : vector<1x8x128xf32> to vector<8x128xf32>
    %324 = arith.truncf %321 : vector<8x32xf32> to vector<8x32xbf16>
    %cst_103 = arith.constant dense<0.000000e+00> : vector<8x128xf32>
    %325 = tpu.matmul %324, %236, %cst_103 {dimension_numbers = #tpu.dot_dimension_numbers<[1], [0], [0], [1], [0, 0, 1, 1], [], []>} : vector<8x32xbf16>, vector<32x128xbf16>, vector<8x128xf32> -> vector<8x128xf32>
    %326 = arith.addf %323, %325 : vector<8x128xf32>
    %327 = math.tanh %326 : vector<8x128xf32>
    %328 = vector.extract_strided_slice %327 {offsets = [0, 0], sizes = [8, 32], strides = [1, 1]} : vector<8x128xf32> to vector<8x32xf32>
    %cst_104 = arith.constant 5.000000e-01 : f32
    %329 = vector.broadcast %cst_104 : f32 to vector<8x32xf32>
    %330 = arith.mulf %329, %328 : vector<8x32xf32>
    %cst_105 = arith.constant 5.000000e-01 : f32
    %331 = vector.broadcast %cst_105 : f32 to vector<8x32xf32>
    %332 = arith.addf %330, %331 : vector<8x32xf32>
    %333 = vector.extract_strided_slice %327 {offsets = [0, 32], sizes = [8, 32], strides = [1, 1]} : vector<8x128xf32> to vector<8x32xf32>
    %cst_106 = arith.constant 5.000000e-01 : f32
    %334 = vector.broadcast %cst_106 : f32 to vector<8x32xf32>
    %335 = arith.mulf %334, %333 : vector<8x32xf32>
    %cst_107 = arith.constant 5.000000e-01 : f32
    %336 = vector.broadcast %cst_107 : f32 to vector<8x32xf32>
    %337 = arith.addf %335, %336 : vector<8x32xf32>
    %338 = vector.extract_strided_slice %327 {offsets = [0, 64], sizes = [8, 32], strides = [1, 1]} : vector<8x128xf32> to vector<8x32xf32>
    %339 = vector.extract_strided_slice %327 {offsets = [0, 96], sizes = [8, 32], strides = [1, 1]} : vector<8x128xf32> to vector<8x32xf32>
    %cst_108 = arith.constant 5.000000e-01 : f32
    %340 = vector.broadcast %cst_108 : f32 to vector<8x32xf32>
    %341 = arith.mulf %340, %339 : vector<8x32xf32>
    %cst_109 = arith.constant 5.000000e-01 : f32
    %342 = vector.broadcast %cst_109 : f32 to vector<8x32xf32>
    %343 = arith.addf %341, %342 : vector<8x32xf32>
    %344 = arith.mulf %337, %319 : vector<8x32xf32>
    %345 = arith.mulf %332, %338 : vector<8x32xf32>
    %346 = arith.addf %344, %345 : vector<8x32xf32>
    %347 = math.tanh %346 : vector<8x32xf32>
    %348 = arith.mulf %343, %347 : vector<8x32xf32>
    %349 = vector.extract_strided_slice %235 {offsets = [4, 0, 0], sizes = [1, 8, 128], strides = [1, 1, 1]} : vector<8x8x128xf32> to vector<1x8x128xf32>
    %350 = vector.shape_cast %349 : vector<1x8x128xf32> to vector<8x128xf32>
    %351 = arith.truncf %348 : vector<8x32xf32> to vector<8x32xbf16>
    %cst_110 = arith.constant dense<0.000000e+00> : vector<8x128xf32>
    %352 = tpu.matmul %351, %236, %cst_110 {dimension_numbers = #tpu.dot_dimension_numbers<[1], [0], [0], [1], [0, 0, 1, 1], [], []>} : vector<8x32xbf16>, vector<32x128xbf16>, vector<8x128xf32> -> vector<8x128xf32>
    %353 = arith.addf %350, %352 : vector<8x128xf32>
    %354 = math.tanh %353 : vector<8x128xf32>
    %355 = vector.extract_strided_slice %354 {offsets = [0, 0], sizes = [8, 32], strides = [1, 1]} : vector<8x128xf32> to vector<8x32xf32>
    %cst_111 = arith.constant 5.000000e-01 : f32
    %356 = vector.broadcast %cst_111 : f32 to vector<8x32xf32>
    %357 = arith.mulf %356, %355 : vector<8x32xf32>
    %cst_112 = arith.constant 5.000000e-01 : f32
    %358 = vector.broadcast %cst_112 : f32 to vector<8x32xf32>
    %359 = arith.addf %357, %358 : vector<8x32xf32>
    %360 = vector.extract_strided_slice %354 {offsets = [0, 32], sizes = [8, 32], strides = [1, 1]} : vector<8x128xf32> to vector<8x32xf32>
    %cst_113 = arith.constant 5.000000e-01 : f32
    %361 = vector.broadcast %cst_113 : f32 to vector<8x32xf32>
    %362 = arith.mulf %361, %360 : vector<8x32xf32>
    %cst_114 = arith.constant 5.000000e-01 : f32
    %363 = vector.broadcast %cst_114 : f32 to vector<8x32xf32>
    %364 = arith.addf %362, %363 : vector<8x32xf32>
    %365 = vector.extract_strided_slice %354 {offsets = [0, 64], sizes = [8, 32], strides = [1, 1]} : vector<8x128xf32> to vector<8x32xf32>
    %366 = vector.extract_strided_slice %354 {offsets = [0, 96], sizes = [8, 32], strides = [1, 1]} : vector<8x128xf32> to vector<8x32xf32>
    %cst_115 = arith.constant 5.000000e-01 : f32
    %367 = vector.broadcast %cst_115 : f32 to vector<8x32xf32>
    %368 = arith.mulf %367, %366 : vector<8x32xf32>
    %cst_116 = arith.constant 5.000000e-01 : f32
    %369 = vector.broadcast %cst_116 : f32 to vector<8x32xf32>
    %370 = arith.addf %368, %369 : vector<8x32xf32>
    %371 = arith.mulf %364, %346 : vector<8x32xf32>
    %372 = arith.mulf %359, %365 : vector<8x32xf32>
    %373 = arith.addf %371, %372 : vector<8x32xf32>
    %374 = math.tanh %373 : vector<8x32xf32>
    %375 = arith.mulf %370, %374 : vector<8x32xf32>
    %376 = vector.extract_strided_slice %235 {offsets = [5, 0, 0], sizes = [1, 8, 128], strides = [1, 1, 1]} : vector<8x8x128xf32> to vector<1x8x128xf32>
    %377 = vector.shape_cast %376 : vector<1x8x128xf32> to vector<8x128xf32>
    %378 = arith.truncf %375 : vector<8x32xf32> to vector<8x32xbf16>
    %cst_117 = arith.constant dense<0.000000e+00> : vector<8x128xf32>
    %379 = tpu.matmul %378, %236, %cst_117 {dimension_numbers = #tpu.dot_dimension_numbers<[1], [0], [0], [1], [0, 0, 1, 1], [], []>} : vector<8x32xbf16>, vector<32x128xbf16>, vector<8x128xf32> -> vector<8x128xf32>
    %380 = arith.addf %377, %379 : vector<8x128xf32>
    %381 = math.tanh %380 : vector<8x128xf32>
    %382 = vector.extract_strided_slice %381 {offsets = [0, 0], sizes = [8, 32], strides = [1, 1]} : vector<8x128xf32> to vector<8x32xf32>
    %cst_118 = arith.constant 5.000000e-01 : f32
    %383 = vector.broadcast %cst_118 : f32 to vector<8x32xf32>
    %384 = arith.mulf %383, %382 : vector<8x32xf32>
    %cst_119 = arith.constant 5.000000e-01 : f32
    %385 = vector.broadcast %cst_119 : f32 to vector<8x32xf32>
    %386 = arith.addf %384, %385 : vector<8x32xf32>
    %387 = vector.extract_strided_slice %381 {offsets = [0, 32], sizes = [8, 32], strides = [1, 1]} : vector<8x128xf32> to vector<8x32xf32>
    %cst_120 = arith.constant 5.000000e-01 : f32
    %388 = vector.broadcast %cst_120 : f32 to vector<8x32xf32>
    %389 = arith.mulf %388, %387 : vector<8x32xf32>
    %cst_121 = arith.constant 5.000000e-01 : f32
    %390 = vector.broadcast %cst_121 : f32 to vector<8x32xf32>
    %391 = arith.addf %389, %390 : vector<8x32xf32>
    %392 = vector.extract_strided_slice %381 {offsets = [0, 64], sizes = [8, 32], strides = [1, 1]} : vector<8x128xf32> to vector<8x32xf32>
    %393 = vector.extract_strided_slice %381 {offsets = [0, 96], sizes = [8, 32], strides = [1, 1]} : vector<8x128xf32> to vector<8x32xf32>
    %cst_122 = arith.constant 5.000000e-01 : f32
    %394 = vector.broadcast %cst_122 : f32 to vector<8x32xf32>
    %395 = arith.mulf %394, %393 : vector<8x32xf32>
    %cst_123 = arith.constant 5.000000e-01 : f32
    %396 = vector.broadcast %cst_123 : f32 to vector<8x32xf32>
    %397 = arith.addf %395, %396 : vector<8x32xf32>
    %398 = arith.mulf %391, %373 : vector<8x32xf32>
    %399 = arith.mulf %386, %392 : vector<8x32xf32>
    %400 = arith.addf %398, %399 : vector<8x32xf32>
    %401 = math.tanh %400 : vector<8x32xf32>
    %402 = arith.mulf %397, %401 : vector<8x32xf32>
    %403 = vector.extract_strided_slice %235 {offsets = [6, 0, 0], sizes = [1, 8, 128], strides = [1, 1, 1]} : vector<8x8x128xf32> to vector<1x8x128xf32>
    %404 = vector.shape_cast %403 : vector<1x8x128xf32> to vector<8x128xf32>
    %405 = arith.truncf %402 : vector<8x32xf32> to vector<8x32xbf16>
    %cst_124 = arith.constant dense<0.000000e+00> : vector<8x128xf32>
    %406 = tpu.matmul %405, %236, %cst_124 {dimension_numbers = #tpu.dot_dimension_numbers<[1], [0], [0], [1], [0, 0, 1, 1], [], []>} : vector<8x32xbf16>, vector<32x128xbf16>, vector<8x128xf32> -> vector<8x128xf32>
    %407 = arith.addf %404, %406 : vector<8x128xf32>
    %408 = math.tanh %407 : vector<8x128xf32>
    %409 = vector.extract_strided_slice %408 {offsets = [0, 0], sizes = [8, 32], strides = [1, 1]} : vector<8x128xf32> to vector<8x32xf32>
    %cst_125 = arith.constant 5.000000e-01 : f32
    %410 = vector.broadcast %cst_125 : f32 to vector<8x32xf32>
    %411 = arith.mulf %410, %409 : vector<8x32xf32>
    %cst_126 = arith.constant 5.000000e-01 : f32
    %412 = vector.broadcast %cst_126 : f32 to vector<8x32xf32>
    %413 = arith.addf %411, %412 : vector<8x32xf32>
    %414 = vector.extract_strided_slice %408 {offsets = [0, 32], sizes = [8, 32], strides = [1, 1]} : vector<8x128xf32> to vector<8x32xf32>
    %cst_127 = arith.constant 5.000000e-01 : f32
    %415 = vector.broadcast %cst_127 : f32 to vector<8x32xf32>
    %416 = arith.mulf %415, %414 : vector<8x32xf32>
    %cst_128 = arith.constant 5.000000e-01 : f32
    %417 = vector.broadcast %cst_128 : f32 to vector<8x32xf32>
    %418 = arith.addf %416, %417 : vector<8x32xf32>
    %419 = vector.extract_strided_slice %408 {offsets = [0, 64], sizes = [8, 32], strides = [1, 1]} : vector<8x128xf32> to vector<8x32xf32>
    %420 = vector.extract_strided_slice %408 {offsets = [0, 96], sizes = [8, 32], strides = [1, 1]} : vector<8x128xf32> to vector<8x32xf32>
    %cst_129 = arith.constant 5.000000e-01 : f32
    %421 = vector.broadcast %cst_129 : f32 to vector<8x32xf32>
    %422 = arith.mulf %421, %420 : vector<8x32xf32>
    %cst_130 = arith.constant 5.000000e-01 : f32
    %423 = vector.broadcast %cst_130 : f32 to vector<8x32xf32>
    %424 = arith.addf %422, %423 : vector<8x32xf32>
    %425 = arith.mulf %418, %400 : vector<8x32xf32>
    %426 = arith.mulf %413, %419 : vector<8x32xf32>
    %427 = arith.addf %425, %426 : vector<8x32xf32>
    %428 = math.tanh %427 : vector<8x32xf32>
    %429 = arith.mulf %424, %428 : vector<8x32xf32>
    %430 = vector.extract_strided_slice %235 {offsets = [7, 0, 0], sizes = [1, 8, 128], strides = [1, 1, 1]} : vector<8x8x128xf32> to vector<1x8x128xf32>
    %431 = vector.shape_cast %430 : vector<1x8x128xf32> to vector<8x128xf32>
    %432 = arith.truncf %429 : vector<8x32xf32> to vector<8x32xbf16>
    %cst_131 = arith.constant dense<0.000000e+00> : vector<8x128xf32>
    %433 = tpu.matmul %432, %236, %cst_131 {dimension_numbers = #tpu.dot_dimension_numbers<[1], [0], [0], [1], [0, 0, 1, 1], [], []>} : vector<8x32xbf16>, vector<32x128xbf16>, vector<8x128xf32> -> vector<8x128xf32>
    %434 = arith.addf %431, %433 : vector<8x128xf32>
    %435 = math.tanh %434 : vector<8x128xf32>
    %436 = vector.extract_strided_slice %435 {offsets = [0, 0], sizes = [8, 32], strides = [1, 1]} : vector<8x128xf32> to vector<8x32xf32>
    %cst_132 = arith.constant 5.000000e-01 : f32
    %437 = vector.broadcast %cst_132 : f32 to vector<8x32xf32>
    %438 = arith.mulf %437, %436 : vector<8x32xf32>
    %cst_133 = arith.constant 5.000000e-01 : f32
    %439 = vector.broadcast %cst_133 : f32 to vector<8x32xf32>
    %440 = arith.addf %438, %439 : vector<8x32xf32>
    %441 = vector.extract_strided_slice %435 {offsets = [0, 32], sizes = [8, 32], strides = [1, 1]} : vector<8x128xf32> to vector<8x32xf32>
    %cst_134 = arith.constant 5.000000e-01 : f32
    %442 = vector.broadcast %cst_134 : f32 to vector<8x32xf32>
    %443 = arith.mulf %442, %441 : vector<8x32xf32>
    %cst_135 = arith.constant 5.000000e-01 : f32
    %444 = vector.broadcast %cst_135 : f32 to vector<8x32xf32>
    %445 = arith.addf %443, %444 : vector<8x32xf32>
    %446 = vector.extract_strided_slice %435 {offsets = [0, 64], sizes = [8, 32], strides = [1, 1]} : vector<8x128xf32> to vector<8x32xf32>
    %447 = vector.extract_strided_slice %435 {offsets = [0, 96], sizes = [8, 32], strides = [1, 1]} : vector<8x128xf32> to vector<8x32xf32>
    %cst_136 = arith.constant 5.000000e-01 : f32
    %448 = vector.broadcast %cst_136 : f32 to vector<8x32xf32>
    %449 = arith.mulf %448, %447 : vector<8x32xf32>
    %cst_137 = arith.constant 5.000000e-01 : f32
    %450 = vector.broadcast %cst_137 : f32 to vector<8x32xf32>
    %451 = arith.addf %449, %450 : vector<8x32xf32>
    %452 = arith.mulf %445, %427 : vector<8x32xf32>
    %453 = arith.mulf %440, %446 : vector<8x32xf32>
    %454 = arith.addf %452, %453 : vector<8x32xf32>
    %455 = math.tanh %454 : vector<8x32xf32>
    %456 = arith.mulf %451, %455 : vector<8x32xf32>
    %cst_138 = arith.constant 0.000000e+00 : f32
    %457 = vector.broadcast %cst_138 : f32 to vector<8x32xf32>
    %458 = arith.maximumf %456, %457 : vector<8x32xf32>
    %c0_139 = arith.constant 0 : index
    %c0_140 = arith.constant 0 : index
    %459 = vector.load %arg9[%c0_139, %c0_140] : memref<32x128xf32, #tpu.memory_space<vmem>>, vector<32x128xf32>
    %cst_141 = arith.constant dense<0.000000e+00> : vector<8x128xf32>
    %460 = tpu.matmul %458, %459, %cst_141 {dimension_numbers = #tpu.dot_dimension_numbers<[1], [0], [0], [1], [0, 0, 1, 1], [], []>} : vector<8x32xf32>, vector<32x128xf32>, vector<8x128xf32> -> vector<8x128xf32>
    %c0_142 = arith.constant 0 : index
    %c0_143 = arith.constant 0 : index
    %461 = vector.load %arg10[%c0_142, %c0_143] : memref<1x128xf32, #tpu.memory_space<vmem>>, vector<1x128xf32>
    %462 = vector.broadcast %461 : vector<1x128xf32> to vector<8x128xf32>
    %463 = arith.addf %460, %462 : vector<8x128xf32>
    %c0_144 = arith.constant 0 : index
    %c0_145 = arith.constant 0 : index
    %464 = vector.load %arg11[%c0_144, %c0_145] : memref<8x128xf32, #tpu.memory_space<vmem>>, vector<8x128xf32>
    tpu.vector_store %arg11[%c0_144, %c0_145], %463 {strides = array<i32>} : memref<8x128xf32, #tpu.memory_space<vmem>>, vector<8x128xf32>,
    return
  }
}

</mosaic_0001>

<bundles_post_ra>
// kernel: lstm_model_forward.1
= control target key start
LH: loop header
LB: loop body
LE: loop exit
PB: predicated region body
PF: predicated region fallthrough
CT: control target
= control target key end

     0   :  { %vm53_vm0 = vcmask 130048   ;;  %vm138_vm1 = vcmask 261120   ;;  %s1068_s29 = smov 64   ;;  %s1069_s13 = smov 32   ;;  %s1411_s4 = inlined_call_operand.vmem [shape: bf16[32,128], index: 4, kind: input, shape index: {}]   ;;  %s1412_s3 = inlined_call_operand.vmem [shape: f32[16,128], index: 3, kind: input, shape index: {}]   ;;  %s1413_s0 = inlined_call_operand.vmem [shape: f32[8,8,16], index: 0, kind: input, shape index: {}]   ;;  %s1414_s1 = inlined_call_operand.vmem [shape: f32[2,8,32], index: 1, kind: input, shape index: {}]   ;;  %s1415_s5 = inlined_call_operand.vmem [shape: f32[1,128], index: 5, kind: input, shape index: {}]   ;;  %s1416_s2 = inlined_call_operand.vmem [shape: f32[2,8,32], index: 2, kind: input, shape index: {}]   ;;  %s1417_s6 = inlined_call_operand.vmem [shape: f32[32,128], index: 6, kind: input, shape index: {}]   ;;  %s1418_s8 = inlined_call_operand.vmem [shape: f32[1,128], index: 8, kind: input, shape index: {}]   ;;  %s1419_s7 = inlined_call_operand.vmem [shape: bf16[32,128], index: 7, kind: input, shape index: {}]   ;;  %s1420_s9 = inlined_call_operand.vmem [shape: f32[32,128], index: 9, kind: input, shape index: {}]   ;;  %s1421_s10 = inlined_call_operand.vmem [shape: f32[1,128], index: 10, kind: input, shape index: {}]   ;;  %s1422_s11 = inlined_call_operand.vmem [shape: f32[8,128], index: 11, kind: output, shape index: {}]  }
   0x1   :  { %v996_v0 = vld [vmem:[%s1411_s4 + $0x8] sm:$0xff]  ;;  %v47_v2 = vld [vmem:[%s1412_s3] sm:$0xff]  ;;  %v41_v46 = vld [vmem:[%s1413_s0 + $0x10] sm:$0xff] }
   0x2   :  { %v48_v1 = vld [vmem:[%s1412_s3 + $0x8] sm:$0xff]  ;;  %v39_v3 = vld [vmem:[%s1413_s0] sm:$0xff]  ;;  %148 = vmatpush.bf16.msra.mxu1 %v996_v0  ;;  %193 = vmatpush.bf16.msra.mxu2 %v996_v0  ;;  %v42_v62 = vld [vmem:[%s1413_s0 + $0x18] sm:$0xff] }
   0x3   :  { %92 = vmatpush.msra.mxu0 %v48_v1  ;;  %v995_v4 = vld [vmem:[%s1411_s4] sm:$0xff]  ;;  %234 = vmatpush.bf16.msra.mxu3 %v996_v0  ;;  %v40_v27 = vld [vmem:[%s1413_s0 + $0x8] sm:$0xff] }
   0x4   :  { %v123_v5 = vld [vmem:[%s1414_s1] sm:$0xff] }
   0x5   :  { %93 = vmatpush.msra.mxu0 %v47_v2  ;;  %v125_v6 = vpack.c.bf16 %v123_v5, %v123_v5  ;;  %v1153_v7 = vld [vmem:[%s1415_s5] ss:$0 sm:$0xff] }
   0x6   :  { %944 = vmatmul.msk.f32.vlgmr.msra.gmra.mxu0 %vm53_vm0, %v39_v3  ;;  %149 = vmatpush.bf16.msra.mxu1 %v995_v4  ;;  %v124_v14 = vld [vmem:[%s1416_s2] sm:$0xff] }
   0x7   :  { %194 = vmatpush.bf16.msra.mxu2 %v995_v4  ;;  %235 = vmatpush.bf16.msra.mxu3 %v995_v4 }
   0x9   :  { %960 = vmatmul.msk.bf16.vlgmr.msra.gmra.mxu1 %vm138_vm1, %v125_v6 }
   0xa   :  { %275 = vmatpush.bf16.msrb.mxu1 %v996_v0 }
   0xb   :  { %316 = vmatpush.bf16.msrb.mxu2 %v996_v0  ;;  %357 = vmatpush.bf16.msrb.mxu3 %v996_v0 }
   0xe   :  { %276 = vmatpush.bf16.msrb.mxu1 %v995_v4  ;;  %945 = vmatmul.msk.f32.gmra.mxu0 %vm53_vm0, %v40_v27 }
   0xf   :  { %317 = vmatpush.bf16.msrb.mxu2 %v995_v4  ;;  %358 = vmatpush.bf16.msrb.mxu3 %v995_v4 }
  0x12   :  { %398 = vmatpush.bf16.msra.mxu1 %v996_v0 }
  0x16   :  { %399 = vmatpush.bf16.msra.mxu1 %v995_v4  ;;  %946 = vmatmul.msk.f32.gmra.mxu0 %vm53_vm0, %v41_v46 }
  0x1e   :  { %947 = vmatmul.msk.f32.gmra.mxu0 %vm53_vm0, %v42_v62 }
  0x83   :  { %v95_v8 = vpop.f32.mrf.mxu0 }
  0x84   :  { %v96_v9 = vadd.f32 %v1153_v7, %v95_v8 }
  0x86   :  { %v151_v10 = vpop.f32.mrf.mxu1 }
  0x87   :  { %v155_v11 = vadd.f32 %v151_v10, %v96_v9 }
  0x89   :  { %1004 = vtanh.f32 %v155_v11 }
  0x8b   :  { %v98_v29 = vpop.f32.mrf.mxu0 }
  0x8c   :  { %v99_v30 = vadd.f32 %v1153_v7, %v98_v29 }
  0x8e   :  { %v153_v12 = vpop.f32.mrf.mxu1 }
  0x8f   :  { %v1005_v13 = vpop.eup %1004 }
  0x90   :  { %165 = vrot.lane.b32.xlu0 %v1005_v13, %s1068_s29  ;;  %v157_v15 = vmul.f32 0.5, %v1005_v13 }
  0x92   :  { %v158_v16 = vadd.f32 0.5, %v157_v15 }
  0x93   :  { %v101_v48 = vpop.f32.mrf.mxu0 }
  0x94   :  { %v102_v49 = vadd.f32 %v1153_v7, %v101_v48 }
  0x98   :  { %160 = vrot.lane.b32.xlu0 %v124_v14, %s1069_s13 }
  0x9b   :  { %v104_v3 = vpop.f32.mrf.mxu0 }
 0x102   :  { %v166_v17 = vpop.permute.xlu0 %165 }
 0x103   :  { %v168_v18 = vmul.f32 %v166_v17, %v158_v16 }
 0x105   :  { %170 = vrot.lane.b32.xlu1 %v168_v18, %s1069_s13 }
 0x10a   :  { %v161_v19 = vpop.permute.xlu0 %160 }
 0x10b   :  { %v163_v20 = vmul.f32 %v161_v19, %v158_v16 }
 0x177   :  { %v171_v21 = vpop.permute.xlu1 %170 }
 0x178   :  { %v173_v22 = vadd.f32 %v171_v21, %v163_v20  ;;  %v43_v21 = vld [vmem:[%s1413_s0 + $0x20] sm:$0xff] }
 0x179   :  { %948 = vmatmul.msk.f32.gmra.mxu0 %vm53_vm0, %v43_v21 }
 0x17a   :  { %1006 = vtanh.f32 %v173_v22 }
 0x180   :  { %v1007_v23 = vpop.eup %1006 }
 0x181   :  { %176 = vrot.lane.b32.xlu1 %v1007_v23, %s1068_s29 }
 0x1f3   :  { %v177_v24 = vpop.permute.xlu1 %176 }
 0x1f4   :  { %v1163_v25 = vmul.f32 %v177_v24, %v158_v16 }
 0x1f6   :  { %v180_v26 = vpack.c.bf16 %v1163_v25, %v1163_v25  ;;  %v107_v23 = vpop.f32.mrf.mxu0 }
 0x1f7   :  { %v108_v24 = vadd.f32 %v1153_v7, %v107_v23 }
 0x1f8   :  { %182 = vrot.lane.b32.xlu2 %v180_v26, %s1069_s13 }
 0x252   :  { %v183_v28 = vpop.permute.xlu2 %182 }
 0x253   :  { %961 = vmatmul.msk.bf16.vlgmr.msra.gmra.mxu2 %vm138_vm1, %v183_v28 }
 0x254   :  { %439 = vmatpush.bf16.msra.mxu2 %v996_v0 }
 0x258   :  { %440 = vmatpush.bf16.msra.mxu2 %v995_v4  ;;  %v105_v4 = vadd.f32 %v1153_v7, %v104_v3  ;;  %v1260_v3 = vld [vmem:[%s1419_s7 + $0x8] sm:$0xff] }
 0x259   :  { %672 = vmatpush.bf16.msrb.mxu0 %v1260_v3 }
 0x2d6   :  { %v196_v31 = vpop.f32.mrf.mxu2 }
 0x2d7   :  { %v200_v32 = vadd.f32 %v196_v31, %v99_v30 }
 0x2d9   :  { %1008 = vtanh.f32 %v200_v32 }
 0x2de   :  { %v198_v33 = vpop.f32.mrf.mxu2 }
 0x2df   :  { %v1009_v34 = vpop.eup %1008 }
 0x2e0   :  { %206 = vrot.lane.b32.xlu2 %v1009_v34, %s1068_s29  ;;  %v202_v35 = vmul.f32 0.5, %v1009_v34 }
 0x2e2   :  { %v203_v36 = vadd.f32 0.5, %v202_v35 }
 0x2e4   :  { %v204_v39 = vmul.f32 %v203_v36, %v173_v22 }
 0x33a   :  { %v207_v37 = vpop.permute.xlu2 %206 }
 0x33b   :  { %v209_v38 = vmul.f32 %v207_v37, %v203_v36 }
 0x33d   :  { %211 = vrot.lane.b32.xlu0 %v209_v38, %s1069_s13 }
 0x3af   :  { %v212_v40 = vpop.permute.xlu0 %211 }
 0x3b0   :  { %v214_v41 = vadd.f32 %v212_v40, %v204_v39 }
 0x3b2   :  { %1010 = vtanh.f32 %v214_v41 }
 0x3b8   :  { %v1011_v42 = vpop.eup %1010 }
 0x3b9   :  { %217 = vrot.lane.b32.xlu1 %v1011_v42, %s1068_s29 }
 0x42b   :  { %v218_v43 = vpop.permute.xlu1 %217 }
 0x42c   :  { %v1177_v44 = vmul.f32 %v218_v43, %v203_v36 }
 0x42e   :  { %v221_v45 = vpack.c.bf16 %v1177_v44, %v1177_v44 }
 0x430   :  { %223 = vrot.lane.b32.xlu2 %v221_v45, %s1069_s13 }
 0x48a   :  { %v224_v47 = vpop.permute.xlu2 %223 }
 0x48b   :  { %962 = vmatmul.msk.bf16.vlgmr.msra.gmra.mxu3 %vm138_vm1, %v224_v47 }
 0x50e   :  { %v237_v50 = vpop.f32.mrf.mxu3 }
 0x50f   :  { %v241_v51 = vadd.f32 %v237_v50, %v102_v49 }
 0x511   :  { %1012 = vtanh.f32 %v241_v51 }
 0x516   :  { %v239_v52 = vpop.f32.mrf.mxu3 }
 0x517   :  { %v1013_v53 = vpop.eup %1012 }
 0x518   :  { %247 = vrot.lane.b32.xlu0 %v1013_v53, %s1068_s29  ;;  %v243_v54 = vmul.f32 0.5, %v1013_v53 }
 0x51a   :  { %v244_v55 = vadd.f32 0.5, %v243_v54  ;;  %v470_v54 = vld [vmem:[%s1417_s6 + $0x18] sm:$0xff] }
 0x51b   :  { %527 = vmatpush.msra.mxu3 %v470_v54 }
 0x51c   :  { %v245_v58 = vmul.f32 %v244_v55, %v214_v41  ;;  %v44_v41 = vld [vmem:[%s1413_s0 + $0x28] sm:$0xff] }
 0x51d   :  { %949 = vmatmul.msk.f32.gmra.mxu0 %vm53_vm0, %v44_v41 }
 0x58a   :  { %v248_v56 = vpop.permute.xlu0 %247 }
 0x58b   :  { %v250_v57 = vmul.f32 %v248_v56, %v244_v55  ;;  %v468_v56 = vld [vmem:[%s1417_s6 + $0x8] sm:$0xff] }
 0x58d   :  { %252 = vrot.lane.b32.xlu1 %v250_v57, %s1069_s13  ;;  %v467_v57 = vld [vmem:[%s1417_s6] sm:$0xff] }
 0x59a   :  { %v110_v43 = vpop.f32.mrf.mxu0 }
 0x59b   :  { %v111_v45 = vadd.f32 %v1153_v7, %v110_v43 }
 0x5ff   :  { %v253_v59 = vpop.permute.xlu1 %252 }
 0x600   :  { %v255_v60 = vadd.f32 %v253_v59, %v245_v58 }
 0x602   :  { %1014 = vtanh.f32 %v255_v60 }
 0x608   :  { %v1015_v61 = vpop.eup %1014 }
 0x609   :  { %258 = vrot.lane.b32.xlu2 %v1015_v61, %s1068_s29 }
 0x663   :  { %v259_v63 = vpop.permute.xlu2 %258 }
 0x664   :  { %v1195_v0 = vmul.f32 %v259_v63, %v244_v55  ;;  %v469_v55 = vld [vmem:[%s1417_s6 + $0x10] sm:$0xff] }
 0x665   :  { %528 = vmatpush.msra.mxu3 %v469_v55 }
 0x666   :  { %v262_v1 = vpack.c.bf16 %v1195_v0, %v1195_v0 }
 0x667   :  { %529 = vmatpush.msra.mxu3 %v468_v56 }
 0x668   :  { %264 = vrot.lane.b32.xlu0 %v262_v1, %s1069_s13 }
 0x669   :  { %530 = vmatpush.msra.mxu3 %v467_v57 }
 0x6da   :  { %v265_v2 = vpop.permute.xlu0 %264 }
 0x6db   :  { %963 = vmatmul.msk.bf16.vlgmr.msrb.gmra.mxu1 %vm138_vm1, %v265_v2  ;;  %v45_v2 = vld [vmem:[%s1413_s0 + $0x30] sm:$0xff] }
 0x6dc   :  { %950 = vmatmul.msk.f32.gmra.mxu0 %vm53_vm0, %v45_v2  ;;  %586 = vmatpush.bf16.msrb.mxu1 %v1260_v3 }
 0x758   :  { %v278_v5 = vpop.f32.mrf.mxu1 }
 0x759   :  { %v282_v6 = vadd.f32 %v278_v5, %v105_v4  ;;  %v1266_v4 = vld [vmem:[%s1419_s7] sm:$0xff] }
 0x75a   :  { %587 = vmatpush.bf16.msrb.mxu1 %v1266_v4  ;;  %673 = vmatpush.bf16.msrb.mxu0 %v1266_v4 }
 0x75b   :  { %1016 = vtanh.f32 %v282_v6  ;;  %v976_v6 = vld [vmem:[%s1414_s1 + $0x8] sm:$0xff] }
 0x75e   :  { %795 = vmatpush.bf16.msra.mxu0 %v1260_v3 }
 0x760   :  { %v280_v8 = vpop.f32.mrf.mxu1 }
 0x761   :  { %v1017_v9 = vpop.eup %1016  ;;  %v564_v8 = vpack.c.bf16 %v976_v6, %v976_v6 }
 0x762   :  { %288 = vrot.lane.b32.xlu1 %v1017_v9, %s1068_s29  ;;  %v284_v10 = vmul.f32 0.5, %v1017_v9  ;;  %796 = vmatpush.bf16.msra.mxu0 %v1266_v4  ;;  %v113_v9 = vpop.f32.mrf.mxu0 }
 0x764   :  { %v285_v11 = vadd.f32 0.5, %v284_v10  ;;  %v114_v10 = vadd.f32 %v1153_v7, %v113_v9 }
 0x766   :  { %v286_v14 = vmul.f32 %v285_v11, %v255_v60 }
 0x7d4   :  { %v289_v12 = vpop.permute.xlu1 %288 }
 0x7d5   :  { %v291_v13 = vmul.f32 %v289_v12, %v285_v11 }
 0x7d7   :  { %293 = vrot.lane.b32.xlu2 %v291_v13, %s1069_s13 }
 0x831   :  { %v294_v15 = vpop.permute.xlu2 %293 }
 0x832   :  { %v296_v16 = vadd.f32 %v294_v15, %v286_v14  ;;  %v1289_v15 = vld [vmem:[%s1418_s8] ss:$0 sm:$0xff] }
 0x834   :  { %1018 = vtanh.f32 %v296_v16 }
 0x83a   :  { %v1019_v17 = vpop.eup %1018 }
 0x83b   :  { %299 = vrot.lane.b32.xlu0 %v1019_v17, %s1068_s29 }
 0x8ad   :  { %v300_v18 = vpop.permute.xlu0 %299 }
 0x8ae   :  { %v1205_v19 = vmul.f32 %v300_v18, %v285_v11  ;;  %v977_v18 = vld [vmem:[%s1416_s2 + $0x8] sm:$0xff] }
 0x8b0   :  { %v303_v20 = vpack.c.bf16 %v1205_v19, %v1205_v19 }
 0x8b2   :  { %305 = vrot.lane.b32.xlu1 %v303_v20, %s1069_s13 }
 0x924   :  { %v306_v22 = vpop.permute.xlu1 %305 }
 0x925   :  { %964 = vmatmul.msk.bf16.vlgmr.msrb.gmra.mxu2 %vm138_vm1, %v306_v22 }
 0x926   :  { %631 = vmatpush.bf16.msrb.mxu2 %v1260_v3 }
 0x92a   :  { %632 = vmatpush.bf16.msrb.mxu2 %v1266_v4 }
 0x9a8   :  { %v319_v26 = vpop.f32.mrf.mxu2 }
 0x9a9   :  { %v323_v27 = vadd.f32 %v319_v26, %v108_v24 }
 0x9ab   :  { %1020 = vtanh.f32 %v323_v27 }
 0x9b0   :  { %v321_v28 = vpop.f32.mrf.mxu2 }
 0x9b1   :  { %v1021_v29 = vpop.eup %1020 }
 0x9b2   :  { %329 = vrot.lane.b32.xlu2 %v1021_v29, %s1068_s29  ;;  %v325_v30 = vmul.f32 0.5, %v1021_v29 }
 0x9b4   :  { %v326_v31 = vadd.f32 0.5, %v325_v30 }
 0x9b6   :  { %v327_v34 = vmul.f32 %v326_v31, %v296_v16 }
 0xa0c   :  { %v330_v32 = vpop.permute.xlu2 %329 }
 0xa0d   :  { %v332_v33 = vmul.f32 %v330_v32, %v326_v31 }
 0xa0f   :  { %334 = vrot.lane.b32.xlu0 %v332_v33, %s1069_s13 }
 0xa81   :  { %v335_v35 = vpop.permute.xlu0 %334 }
 0xa82   :  { %v337_v36 = vadd.f32 %v335_v35, %v327_v34 }
 0xa84   :  { %1022 = vtanh.f32 %v337_v36 }
 0xa8a   :  { %v1023_v37 = vpop.eup %1022 }
 0xa8b   :  { %340 = vrot.lane.b32.xlu1 %v1023_v37, %s1068_s29 }
 0xafd   :  { %v341_v38 = vpop.permute.xlu1 %340 }
 0xafe   :  { %v1219_v39 = vmul.f32 %v341_v38, %v326_v31 }
 0xb00   :  { %v344_v40 = vpack.c.bf16 %v1219_v39, %v1219_v39 }
 0xb02   :  { %346 = vrot.lane.b32.xlu2 %v344_v40, %s1069_s13 }
 0xb5c   :  { %v347_v42 = vpop.permute.xlu2 %346 }
 0xb5d   :  { %965 = vmatmul.msk.bf16.vlgmr.msrb.gmra.mxu3 %vm138_vm1, %v347_v42 }
 0xbe0   :  { %v360_v46 = vpop.f32.mrf.mxu3 }
 0xbe1   :  { %v364_v47 = vadd.f32 %v360_v46, %v111_v45 }
 0xbe3   :  { %1024 = vtanh.f32 %v364_v47 }
 0xbe8   :  { %v362_v48 = vpop.f32.mrf.mxu3 }
 0xbe9   :  { %v1025_v49 = vpop.eup %1024 }
 0xbea   :  { %370 = vrot.lane.b32.xlu0 %v1025_v49, %s1068_s29  ;;  %v366_v50 = vmul.f32 0.5, %v1025_v49 }
 0xbec   :  { %v367_v51 = vadd.f32 0.5, %v366_v50  ;;  %v46_v50 = vld [vmem:[%s1413_s0 + $0x38] sm:$0xff] }
 0xbed   :  { %951 = vmatmul.msk.f32.gmra.mxu0 %vm53_vm0, %v46_v50 }
 0xc5c   :  { %v371_v52 = vpop.permute.xlu0 %370 }
 0xc5d   :  { %v373_v53 = vmul.f32 %v371_v52, %v367_v51 }
 0xc5f   :  { %375 = vrot.lane.b32.xlu1 %v373_v53, %s1069_s13 }
 0xc67   :  { %483 = vrot.lane.b32.xlu1 %v1163_v25, %s1069_s13  ;;  %v368_v25 = vmul.f32 %v367_v51, %v337_v36 }
 0xcd1   :  { %v376_v58 = vpop.permute.xlu1 %375 }
 0xcd2   :  { %v378_v59 = vadd.f32 %v376_v58, %v368_v25 }
 0xcd4   :  { %1026 = vtanh.f32 %v378_v59 }
 0xcd9   :  { %v484_v60 = vpop.permute.xlu1 %483 }
 0xcda   :  { %v1027_v61 = vpop.eup %1026  ;;  %968 = vmatmul.msk.f32.vlgmr.msra.gmra.mxu3 %vm138_vm1, %v484_v60 }
 0xcdb   :  { %381 = vrot.lane.b32.xlu2 %v1027_v61, %s1068_s29 }
 0xd35   :  { %v382_v62 = vpop.permute.xlu2 %381 }
 0xd36   :  { %v1248_v63 = vmul.f32 %v382_v62, %v367_v51 }
 0xd38   :  { %v385_v1 = vpack.c.bf16 %v1248_v63, %v1248_v63 }
 0xd3a   :  { %387 = vrot.lane.b32.xlu0 %v385_v1, %s1069_s13 }
 0xd5d   :  { %v532_v16 = vpop.f32.mrf.mxu3 }
 0xd5e   :  { %v533_v17 = vadd.f32 %v1289_v15, %v532_v16 }
 0xdac   :  { %v388_v5 = vpop.permute.xlu0 %387 }
 0xdad   :  { %966 = vmatmul.msk.bf16.vlgmr.msra.gmra.mxu1 %vm138_vm1, %v388_v5 }
 0xdae   :  { %713 = vmatpush.bf16.msra.mxu1 %v1260_v3 }
 0xdb2   :  { %714 = vmatpush.bf16.msra.mxu1 %v1266_v4 }
 0xdbd   :  { %986 = vmatmul.msk.bf16.vlgmr.msrb.gmra.mxu1 %vm138_vm1, %v564_v8 }
 0xdbe   :  { %836 = vmatpush.bf16.msrb.mxu1 %v1260_v3 }
 0xdc2   :  { %837 = vmatpush.bf16.msrb.mxu1 %v1266_v4 }
 0xe2a   :  { %v401_v11 = vpop.f32.mrf.mxu1 }
 0xe2b   :  { %v405_v12 = vadd.f32 %v401_v11, %v114_v10  ;;  %v1334_v11 = vpop.f32.mrf.mxu0 }
 0xe2d   :  { %1028 = vtanh.f32 %v405_v12 }
 0xe32   :  { %v403_v13 = vpop.f32.mrf.mxu1 }
 0xe33   :  { %v1029_v14 = vpop.eup %1028 }
 0xe34   :  { %411 = vrot.lane.b32.xlu2 %v1029_v14, %s1068_s29  ;;  %v407_v24 = vmul.f32 0.5, %v1029_v14 }
 0xe36   :  { %v408_v26 = vadd.f32 0.5, %v407_v24 }
 0xe38   :  { %v409_v33 = vmul.f32 %v408_v26, %v378_v59 }
 0xe3a   :  { %v589_v20 = vpop.f32.mrf.mxu1 }
 0xe3b   :  { %v593_v21 = vadd.f32 %v589_v20, %v533_v17 }
 0xe3c   :  { %598 = vrot.lane.b32.xlu2 %v977_v18, %s1069_s13 }
 0xe3d   :  { %1030 = vtanh.f32 %v593_v21 }
 0xe42   :  { %v591_v22 = vpop.f32.mrf.mxu1 }
 0xe43   :  { %v1031_v23 = vpop.eup %1030 }
 0xe44   :  { %603 = vrot.lane.b32.xlu0 %v1031_v23, %s1068_s29  ;;  %v595_v29 = vmul.f32 0.5, %v1031_v23 }
 0xe46   :  { %v596_v30 = vadd.f32 0.5, %v595_v29 }
 0xe8e   :  { %v412_v27 = vpop.permute.xlu2 %411 }
 0xe8f   :  { %v414_v28 = vmul.f32 %v412_v27, %v408_v26 }
 0xe91   :  { %416 = vrot.lane.b32.xlu1 %v414_v28, %s1069_s13 }
 0xe96   :  { %v599_v37 = vpop.permute.xlu2 %598 }
 0xe97   :  { %v601_v38 = vmul.f32 %v599_v37, %v596_v30 }
 0xeb6   :  { %v604_v31 = vpop.permute.xlu0 %603 }
 0xeb7   :  { %v606_v32 = vmul.f32 %v604_v31, %v596_v30 }
 0xeb9   :  { %608 = vrot.lane.b32.xlu0 %v606_v32, %s1069_s13 }
 0xf03   :  { %v417_v34 = vpop.permute.xlu1 %416 }
 0xf04   :  { %v1299_v35 = vadd.f32 %v417_v34, %v409_v33 }
 0xf06   :  { %1032 = vtanh.f32 %v1299_v35 }
 0xf0c   :  { %v1033_v36 = vpop.eup %1032 }
 0xf0d   :  { %422 = vrot.lane.b32.xlu1 %v1033_v36, %s1068_s29 }
 0xf15   :  { %485 = vrot.lane.b32.xlu1 %v1177_v44, %s1069_s13 }
 0xf2b   :  { %v609_v40 = vpop.permute.xlu0 %608 }
 0xf2c   :  { %v611_v41 = vadd.f32 %v609_v40, %v601_v38 }
 0xf2e   :  { %1034 = vtanh.f32 %v611_v41 }
 0xf34   :  { %v1035_v42 = vpop.eup %1034 }
 0xf35   :  { %614 = vrot.lane.b32.xlu2 %v1035_v42, %s1068_s29 }
 0xf7f   :  { %v423_v43 = vpop.permute.xlu1 %422 }
 0xf80   :  { %v1306_v45 = vmul.f32 %v423_v43, %v408_v26 }
 0xf82   :  { %v426_v46 = vpack.c.bf16 %v1306_v45, %v1306_v45 }
 0xf84   :  { %428 = vrot.lane.b32.xlu0 %v426_v46, %s1069_s13 }
 0xf87   :  { %v486_v47 = vpop.permute.xlu1 %485 }
 0xf88   :  { %969 = vmatmul.msk.f32.gmra.mxu3 %vm138_vm1, %v486_v47 }
 0xf8f   :  { %v615_v44 = vpop.permute.xlu2 %614 }
 0xf90   :  { %v617_v48 = vmul.f32 %v615_v44, %v596_v30 }
 0xf92   :  { %v618_v49 = vpack.c.bf16 %v617_v48, %v617_v48 }
 0xf94   :  { %620 = vrot.lane.b32.xlu2 %v618_v49, %s1069_s13 }
 0xfee   :  { %v621_v52 = vpop.permute.xlu2 %620 }
 0xff6   :  { %v429_v51 = vpop.permute.xlu0 %428 }
 0xff7   :  { %967 = vmatmul.msk.bf16.vlgmr.msra.gmra.mxu2 %vm138_vm1, %v429_v51 }
 0xff8   :  { %754 = vmatpush.bf16.msra.mxu2 %v1260_v3 }
 0xffc   :  { %755 = vmatpush.bf16.msra.mxu2 %v1266_v4 }
0x1007   :  { %987 = vmatmul.msk.bf16.vlgmr.msrb.gmra.mxu2 %vm138_vm1, %v621_v52 }
0x1008   :  { %877 = vmatpush.bf16.msrb.mxu2 %v1260_v3 }
0x100b   :  { %v535_v55 = vpop.f32.mrf.mxu3 }
0x100c   :  { %878 = vmatpush.bf16.msrb.mxu2 %v1266_v4  ;;  %v536_v56 = vadd.f32 %v1289_v15, %v535_v55 }
0x107a   :  { %v1323_v53 = vpop.f32.mrf.mxu2 }
0x1082   :  { %v444_v54 = vpop.f32.mrf.mxu2 }
0x108a   :  { %v634_v57 = vpop.f32.mrf.mxu2 }
0x108b   :  { %v638_v25 = vadd.f32 %v634_v57, %v536_v56 }
0x108d   :  { %1036 = vtanh.f32 %v638_v25 }
0x1092   :  { %v636_v58 = vpop.f32.mrf.mxu2 }
0x1093   :  { %v1037_v59 = vpop.eup %1036 }
0x1094   :  { %644 = vrot.lane.b32.xlu0 %v1037_v59, %s1068_s29  ;;  %v640_v60 = vmul.f32 0.5, %v1037_v59 }
0x1096   :  { %v641_v61 = vadd.f32 0.5, %v640_v60 }
0x1098   :  { %v642_v3 = vmul.f32 %v641_v61, %v611_v41 }
0x109c   :  { %487 = vrot.lane.b32.xlu0 %v1195_v0, %s1069_s13 }
0x1106   :  { %v645_v62 = vpop.permute.xlu0 %644 }
0x1107   :  { %v647_v1 = vmul.f32 %v645_v62, %v641_v61 }
0x1109   :  { %649 = vrot.lane.b32.xlu1 %v647_v1, %s1069_s13 }
0x110e   :  { %v488_v2 = vpop.permute.xlu0 %487 }
0x110f   :  { %970 = vmatmul.msk.f32.gmra.mxu3 %vm138_vm1, %v488_v2 }
0x117b   :  { %v650_v4 = vpop.permute.xlu1 %649 }
0x117c   :  { %v652_v5 = vadd.f32 %v650_v4, %v642_v3 }
0x117e   :  { %1038 = vtanh.f32 %v652_v5 }
0x1184   :  { %v1039_v6 = vpop.eup %1038 }
0x1185   :  { %655 = vrot.lane.b32.xlu2 %v1039_v6, %s1068_s29 }
0x1192   :  { %v538_v12 = vpop.f32.mrf.mxu3 }
0x1193   :  { %v539_v13 = vadd.f32 %v1289_v15, %v538_v12 }
0x11df   :  { %v656_v8 = vpop.permute.xlu2 %655 }
0x11e0   :  { %v658_v9 = vmul.f32 %v656_v8, %v641_v61 }
0x11e2   :  { %v659_v10 = vpack.c.bf16 %v658_v9, %v658_v9 }
0x11e4   :  { %661 = vrot.lane.b32.xlu1 %v659_v10, %s1069_s13 }
0x1256   :  { %v662_v0 = vpop.permute.xlu1 %661 }
0x1257   :  { %988 = vmatmul.msk.bf16.vlgmr.msrb.gmra.mxu0 %vm138_vm1, %v662_v0 }
0x12d4   :  { %v675_v14 = vpop.f32.mrf.mxu0 }
0x12d5   :  { %v679_v16 = vadd.f32 %v675_v14, %v539_v13 }
0x12d7   :  { %1040 = vtanh.f32 %v679_v16 }
0x12dc   :  { %v677_v17 = vpop.f32.mrf.mxu0 }
0x12dd   :  { %v1041_v18 = vpop.eup %1040 }
0x12de   :  { %685 = vrot.lane.b32.xlu2 %v1041_v18, %s1068_s29  ;;  %v681_v20 = vmul.f32 0.5, %v1041_v18 }
0x12e0   :  { %v682_v21 = vadd.f32 0.5, %v681_v20 }
0x12e2   :  { %v683_v26 = vmul.f32 %v682_v21, %v652_v5 }
0x12e6   :  { %489 = vrot.lane.b32.xlu2 %v1205_v19, %s1069_s13 }
0x1338   :  { %v686_v22 = vpop.permute.xlu2 %685 }
0x1339   :  { %v688_v23 = vmul.f32 %v686_v22, %v682_v21 }
0x133b   :  { %690 = vrot.lane.b32.xlu0 %v688_v23, %s1069_s13 }
0x1340   :  { %v490_v24 = vpop.permute.xlu2 %489 }
0x1341   :  { %971 = vmatmul.msk.f32.gmra.mxu3 %vm138_vm1, %v490_v24 }
0x13ad   :  { %v691_v27 = vpop.permute.xlu0 %690 }
0x13ae   :  { %v693_v28 = vadd.f32 %v691_v27, %v683_v26 }
0x13b0   :  { %1042 = vtanh.f32 %v693_v28 }
0x13b6   :  { %v1043_v29 = vpop.eup %1042 }
0x13b7   :  { %696 = vrot.lane.b32.xlu1 %v1043_v29, %s1068_s29 }
0x13c4   :  { %v541_v33 = vpop.f32.mrf.mxu3 }
0x13c5   :  { %v542_v34 = vadd.f32 %v1289_v15, %v541_v33 }
0x1429   :  { %v697_v30 = vpop.permute.xlu1 %696 }
0x142a   :  { %v699_v31 = vmul.f32 %v697_v30, %v682_v21 }
0x142c   :  { %v700_v32 = vpack.c.bf16 %v699_v31, %v699_v31 }
0x142e   :  { %702 = vrot.lane.b32.xlu0 %v700_v32, %s1069_s13 }
0x14a0   :  { %v703_v19 = vpop.permute.xlu0 %702 }
0x14a1   :  { %989 = vmatmul.msk.bf16.vlgmr.msra.gmra.mxu1 %vm138_vm1, %v703_v19 }
0x151e   :  { %v716_v36 = vpop.f32.mrf.mxu1 }
0x151f   :  { %v720_v37 = vadd.f32 %v716_v36, %v542_v34 }
0x1521   :  { %1044 = vtanh.f32 %v720_v37 }
0x1526   :  { %v718_v38 = vpop.f32.mrf.mxu1 }
0x1527   :  { %v1045_v40 = vpop.eup %1044 }
0x1528   :  { %726 = vrot.lane.b32.xlu1 %v1045_v40, %s1068_s29  ;;  %v722_v41 = vmul.f32 0.5, %v1045_v40 }
0x152a   :  { %v723_v42 = vadd.f32 0.5, %v722_v41 }
0x152c   :  { %v724_v44 = vmul.f32 %v723_v42, %v693_v28  ;;  %v117_v28 = vadd.f32 %v1153_v7, %v1334_v11 }
0x152e   :  { %v446_v29 = vadd.f32 %v1323_v53, %v117_v28 }
0x1530   :  { %491 = vrot.lane.b32.xlu1 %v1219_v39, %s1069_s13 }
0x159a   :  { %v727_v43 = vpop.permute.xlu1 %726 }
0x159b   :  { %v729_v46 = vmul.f32 %v727_v43, %v723_v42 }
0x159d   :  { %731 = vrot.lane.b32.xlu2 %v729_v46, %s1069_s13 }
0x15a2   :  { %v492_v47 = vpop.permute.xlu1 %491 }
0x15a3   :  { %972 = vmatmul.msk.f32.gmra.mxu3 %vm138_vm1, %v492_v47 }
0x15f7   :  { %v732_v48 = vpop.permute.xlu2 %731 }
0x15f8   :  { %v734_v49 = vadd.f32 %v732_v48, %v724_v44 }
0x15fa   :  { %1046 = vtanh.f32 %v734_v49 }
0x1600   :  { %v1047_v50 = vpop.eup %1046 }
0x1601   :  { %737 = vrot.lane.b32.xlu0 %v1047_v50, %s1068_s29 }
0x1626   :  { %v544_v55 = vpop.f32.mrf.mxu3 }
0x1627   :  { %v545_v56 = vadd.f32 %v1289_v15, %v544_v55 }
0x1673   :  { %v738_v51 = vpop.permute.xlu0 %737 }
0x1674   :  { %v740_v52 = vmul.f32 %v738_v51, %v723_v42 }
0x1676   :  { %v741_v54 = vpack.c.bf16 %v740_v52, %v740_v52 }
0x1678   :  { %743 = vrot.lane.b32.xlu2 %v741_v54, %s1069_s13 }
0x16d2   :  { %v744_v39 = vpop.permute.xlu2 %743 }
0x16d3   :  { %990 = vmatmul.msk.bf16.vlgmr.msra.gmra.mxu2 %vm138_vm1, %v744_v39 }
0x1756   :  { %v757_v57 = vpop.f32.mrf.mxu2 }
0x1757   :  { %v761_v25 = vadd.f32 %v757_v57, %v545_v56 }
0x1759   :  { %1048 = vtanh.f32 %v761_v25 }
0x175e   :  { %v759_v58 = vpop.f32.mrf.mxu2 }
0x175f   :  { %v1049_v59 = vpop.eup %1048 }
0x1760   :  { %767 = vrot.lane.b32.xlu0 %v1049_v59, %s1068_s29  ;;  %v763_v60 = vmul.f32 0.5, %v1049_v59 }
0x1762   :  { %v764_v61 = vadd.f32 0.5, %v763_v60 }
0x1764   :  { %v765_v3 = vmul.f32 %v764_v61, %v734_v49 }
0x1768   :  { %493 = vrot.lane.b32.xlu0 %v1248_v63, %s1069_s13 }
0x17d2   :  { %v768_v62 = vpop.permute.xlu0 %767 }
0x17d3   :  { %v770_v1 = vmul.f32 %v768_v62, %v764_v61 }
0x17d5   :  { %772 = vrot.lane.b32.xlu1 %v770_v1, %s1069_s13 }
0x17da   :  { %v494_v2 = vpop.permute.xlu0 %493 }
0x17db   :  { %973 = vmatmul.msk.f32.gmra.mxu3 %vm138_vm1, %v494_v2 }
0x1847   :  { %v773_v4 = vpop.permute.xlu1 %772 }
0x1848   :  { %v775_v5 = vadd.f32 %v773_v4, %v765_v3 }
0x184a   :  { %1050 = vtanh.f32 %v775_v5 }
0x1850   :  { %v1051_v6 = vpop.eup %1050 }
0x1851   :  { %778 = vrot.lane.b32.xlu2 %v1051_v6, %s1068_s29 }
0x185e   :  { %v547_v0 = vpop.f32.mrf.mxu3 }
0x185f   :  { %v548_v12 = vadd.f32 %v1289_v15, %v547_v0 }
0x18ab   :  { %v779_v8 = vpop.permute.xlu2 %778 }
0x18ac   :  { %v781_v9 = vmul.f32 %v779_v8, %v764_v61 }
0x18ae   :  { %v782_v10 = vpack.c.bf16 %v781_v9, %v781_v9 }
0x18b0   :  { %784 = vrot.lane.b32.xlu1 %v782_v10, %s1069_s13 }
0x1922   :  { %v785_v63 = vpop.permute.xlu1 %784 }
0x1923   :  { %991 = vmatmul.msk.bf16.vlgmr.msra.gmra.mxu0 %vm138_vm1, %v785_v63 }
0x19a0   :  { %v798_v13 = vpop.f32.mrf.mxu0 }
0x19a1   :  { %v802_v14 = vadd.f32 %v798_v13, %v548_v12  ;;  %v908_v13 = vld [vmem:[%s1420_s9 + $0x10] sm:$0xff] }
0x19a3   :  { %1052 = vtanh.f32 %v802_v14  ;;  %v907_v14 = vld [vmem:[%s1420_s9 + $0x8] sm:$0xff] }
0x19a8   :  { %v800_v16 = vpop.f32.mrf.mxu0 }
0x19a9   :  { %v1053_v17 = vpop.eup %1052  ;;  %v906_v16 = vld [vmem:[%s1420_s9] sm:$0xff] }
0x19aa   :  { %808 = vrot.lane.b32.xlu2 %v1053_v17, %s1068_s29  ;;  %v804_v18 = vmul.f32 0.5, %v1053_v17 }
0x19ac   :  { %v805_v20 = vadd.f32 0.5, %v804_v18 }
0x19ae   :  { %v806_v24 = vmul.f32 %v805_v20, %v775_v5 }
0x19b2   :  { %495 = vrot.lane.b32.xlu2 %v1306_v45, %s1069_s13 }
0x1a04   :  { %v809_v21 = vpop.permute.xlu2 %808 }
0x1a05   :  { %v811_v22 = vmul.f32 %v809_v21, %v805_v20 }
0x1a07   :  { %813 = vrot.lane.b32.xlu0 %v811_v22, %s1069_s13  ;;  %v1003_v22 = vld [vmem:[%s1421_s10] ss:$0 sm:$0xff] }
0x1a0c   :  { %v496_v23 = vpop.permute.xlu2 %495 }
0x1a0d   :  { %974 = vmatmul.msk.f32.gmra.mxu3 %vm138_vm1, %v496_v23 }
0x1a79   :  { %v814_v26 = vpop.permute.xlu0 %813 }
0x1a7a   :  { %v816_v27 = vadd.f32 %v814_v26, %v806_v24 }
0x1a7c   :  { %1054 = vtanh.f32 %v816_v27 }
0x1a7d   :  { %1056 = vtanh.f32 %v446_v29 }
0x1a82   :  { %v1055_v30 = vpop.eup %1054 }
0x1a83   :  { %819 = vrot.lane.b32.xlu1 %v1055_v30, %s1068_s29  ;;  %v1057_v45 = vpop.eup %1056 }
0x1a84   :  { %v448_v33 = vmul.f32 0.5, %v1057_v45 }
0x1a86   :  { %v449_v36 = vadd.f32 0.5, %v448_v33 }
0x1a88   :  { %v450_v42 = vmul.f32 %v449_v36, %v1299_v35 }
0x1a8b   :  { %452 = vrot.lane.b32.xlu1 %v1057_v45, %s1068_s29 }
0x1a90   :  { %v550_v53 = vpop.f32.mrf.mxu3 }
0x1a91   :  { %v551_v11 = vadd.f32 %v1289_v15, %v550_v53 }
0x1af5   :  { %v820_v31 = vpop.permute.xlu1 %819 }
0x1af6   :  { %v822_v32 = vmul.f32 %v820_v31, %v805_v20 }
0x1af8   :  { %v823_v19 = vpack.c.bf16 %v822_v32, %v822_v32 }
0x1afa   :  { %825 = vrot.lane.b32.xlu0 %v823_v19, %s1069_s13 }
0x1afd   :  { %v453_v34 = vpop.permute.xlu1 %452 }
0x1afe   :  { %v455_v37 = vmul.f32 %v453_v34, %v449_v36 }
0x1b02   :  { %457 = vrot.lane.b32.xlu0 %v455_v37, %s1069_s13 }
0x1b6c   :  { %v826_v7 = vpop.permute.xlu0 %825 }
0x1b6d   :  { %992 = vmatmul.msk.bf16.vlgmr.msrb.gmra.mxu1 %vm138_vm1, %v826_v7 }
0x1b74   :  { %v458_v41 = vpop.permute.xlu0 %457 }
0x1b75   :  { %v460_v43 = vadd.f32 %v458_v41, %v450_v42 }
0x1bea   :  { %v839_v38 = vpop.f32.mrf.mxu1 }
0x1beb   :  { %v843_v40 = vadd.f32 %v839_v38, %v551_v11 }
0x1bed   :  { %1058 = vtanh.f32 %v843_v40 }
0x1bee   :  { %1060 = vtanh.f32 %v460_v43 }
0x1bf2   :  { %v841_v46 = vpop.f32.mrf.mxu1 }
0x1bf3   :  { %v1059_v47 = vpop.eup %1058 }
0x1bf4   :  { %849 = vrot.lane.b32.xlu2 %v1059_v47, %s1068_s29  ;;  %v1061_v44 = vpop.eup %1060  ;;  %v845_v48 = vmul.f32 0.5, %v1059_v47 }
0x1bf6   :  { %v846_v49 = vadd.f32 0.5, %v845_v48 }
0x1bf8   :  { %v847_v35 = vmul.f32 %v846_v49, %v816_v27 }
0x1bfc   :  { %463 = vrot.lane.b32.xlu2 %v1061_v44, %s1068_s29 }
0x1c4e   :  { %v850_v50 = vpop.permute.xlu2 %849 }
0x1c4f   :  { %v852_v51 = vmul.f32 %v850_v50, %v846_v49 }
0x1c51   :  { %854 = vrot.lane.b32.xlu1 %v852_v51, %s1069_s13 }
0x1c56   :  { %v464_v52 = vpop.permute.xlu2 %463 }
0x1c57   :  { %v466_v54 = vmul.f32 %v464_v52, %v449_v36 }
0x1c59   :  { %497 = vrot.lane.b32.xlu1 %v466_v54, %s1069_s13 }
0x1cc3   :  { %v855_v39 = vpop.permute.xlu1 %854 }
0x1cc4   :  { %v857_v55 = vadd.f32 %v855_v39, %v847_v35 }
0x1cc6   :  { %1062 = vtanh.f32 %v857_v55 }
0x1ccb   :  { %v498_v56 = vpop.permute.xlu1 %497 }
0x1ccc   :  { %v1063_v57 = vpop.eup %1062  ;;  %975 = vmatmul.msk.f32.gmra.mxu3 %vm138_vm1, %v498_v56 }
0x1ccd   :  { %860 = vrot.lane.b32.xlu0 %v1063_v57, %s1068_s29 }
0x1d3f   :  { %v861_v25 = vpop.permute.xlu0 %860 }
0x1d40   :  { %v863_v58 = vmul.f32 %v861_v25, %v846_v49 }
0x1d42   :  { %v864_v59 = vpack.c.bf16 %v863_v58, %v863_v58 }
0x1d44   :  { %866 = vrot.lane.b32.xlu2 %v864_v59, %s1069_s13 }
0x1d4f   :  { %v553_v61 = vpop.f32.mrf.mxu3 }
0x1d50   :  { %v554_v62 = vadd.f32 %v1289_v15, %v553_v61  ;;  %v909_v15 = vld [vmem:[%s1420_s9 + $0x18] sm:$0xff] }
0x1d51   :  { %931 = vmatpush.msrb.mxu0 %v909_v15 }
0x1d53   :  { %932 = vmatpush.msrb.mxu0 %v908_v13 }
0x1d55   :  { %933 = vmatpush.msrb.mxu0 %v907_v14 }
0x1d57   :  { %934 = vmatpush.msrb.mxu0 %v906_v16 }
0x1d9e   :  { %v867_v60 = vpop.permute.xlu2 %866 }
0x1d9f   :  { %993 = vmatmul.msk.bf16.vlgmr.msrb.gmra.mxu2 %vm138_vm1, %v867_v60 }
0x1e22   :  { %v880_v1 = vpop.f32.mrf.mxu2 }
0x1e23   :  { %v884_v2 = vadd.f32 %v880_v1, %v554_v62 }
0x1e25   :  { %1064 = vtanh.f32 %v884_v2 }
0x1e2a   :  { %v882_v3 = vpop.f32.mrf.mxu2 }
0x1e2b   :  { %v1065_v4 = vpop.eup %1064 }
0x1e2c   :  { %890 = vrot.lane.b32.xlu0 %v1065_v4, %s1068_s29  ;;  %v886_v5 = vmul.f32 0.5, %v1065_v4 }
0x1e2e   :  { %v887_v6 = vadd.f32 0.5, %v886_v5 }
0x1e30   :  { %v888_v10 = vmul.f32 %v887_v6, %v857_v55 }
0x1e9e   :  { %v891_v8 = vpop.permute.xlu0 %890 }
0x1e9f   :  { %v893_v9 = vmul.f32 %v891_v8, %v887_v6 }
0x1ea1   :  { %895 = vrot.lane.b32.xlu1 %v893_v9, %s1069_s13 }
0x1f13   :  { %v896_v63 = vpop.permute.xlu1 %895 }
0x1f14   :  { %v898_v0 = vadd.f32 %v896_v63, %v888_v10 }
0x1f16   :  { %1066 = vtanh.f32 %v898_v0 }
0x1f1c   :  { %v1067_v12 = vpop.eup %1066 }
0x1f1d   :  { %901 = vrot.lane.b32.xlu2 %v1067_v12, %s1068_s29 }
0x1f77   :  { %v902_v17 = vpop.permute.xlu2 %901 }
0x1f78   :  { %v904_v18 = vmul.f32 %v902_v17, %v887_v6 }
0x1f7a   :  { %v905_v20 = vmax.f32 %v904_v18, 0.0 }
0x1f7c   :  { %915 = vrot.lane.b32.xlu0 %v905_v20, %s1069_s13 }
0x1fee   :  { %v916_v21 = vpop.permute.xlu0 %915 }
0x1fef   :  { %994 = vmatmul.msk.f32.vlgmr.msrb.gmra.mxu0 %vm138_vm1, %v916_v21 }
0x206c   :  { %v936_v23 = vpop.f32.mrf.mxu0 }
0x206d   :  { %v937_v24 = vadd.f32 %v1003_v22, %v936_v23 }
0x206f   :  { %939 = vst [vmem:[%s1422_s11] sm:$0xff] %v937_v24 }

</bundles_post_ra>
